<compile_context>
chip_gen: v5e
topology: v5e:2x2
jax: 0.10.0
libtpu: 0.0.40
codegen_flags: <defaults>
</compile_context>

<pallas_src>
import functools

import jax
import jax.numpy as jnp
from jax import lax
from jax.experimental import pallas as pl
from jax.experimental.pallas import tpu as pltpu


def _round_up(x, m):
    return (x + m - 1) // m * m


def sr_kernel(x_ref, wq_ref, bq_ref, wk_ref, bk_ref, wv_ref, bv_ref,
              gamma_ref, out_ref, *, mxu_dtype):
    """One batch element per grid step; everything in the native (C, N) layout."""
    x = x_ref[0]                                     # (C, N)  f32
    xm = x.astype(mxu_dtype)

    # 1x1 convolutions == per-pixel linear layers: W @ x on the MXU.
    dn_std = (((1,), (0,)), ((), ()))                # (M, K) x (K, N)
    q = lax.dot_general(wq_ref[...], xm, dn_std,
                        preferred_element_type=jnp.float32) + bq_ref[...]   # (C8p, N)
    k = lax.dot_general(wk_ref[...], xm, dn_std,
                        preferred_element_type=jnp.float32) + bk_ref[...]   # (C8p, N)
    v = lax.dot_general(wv_ref[...], xm, dn_std,
                        preferred_element_type=jnp.float32) + bv_ref[...]   # (C+1, N)
    # The last row of v is exactly 1.0 (zero weight row + unit bias): the value
    # matmul below therefore also emits the softmax row-sums, i-on-lanes.

    # energy[i, j] = sum_o q[o, i] * k[o, j]  -- contract dim 0 of both
    # operands, no transposed copy of q or k.
    energy = lax.dot_general(q.astype(mxu_dtype), k.astype(mxu_dtype),
                             (((0,), (0,)), ((), ())),
                             preferred_element_type=jnp.float32)            # (N, N)

    # Numerically-stable softmax over j with normalization deferred.
    m = jnp.max(energy, axis=-1, keepdims=True)                             # (N, 1)
    p = jnp.exp(energy - m)                                                 # (N, N) f32 (EUP)

    # out_aug[c, i] = sum_j v[c, j] * p[i, j]   (contract the key axis j)
    out_aug = lax.dot_general(v.astype(mxu_dtype), p.astype(mxu_dtype),
                              (((1,), (1,)), ((), ())),
                              preferred_element_type=jnp.float32)           # (C+1, N)

    c = out_ref.shape[1]
    out_u = out_aug[:c]                                        # unnormalized attn @ v
    inv_l = pl.reciprocal(out_aug[c:c + 1], approx=True)       # (1, N), EUP

    gamma = gamma_ref[0, 0]
    out_ref[0] = x + gamma * (out_u * inv_l)


def sr_forward(x_nchw, wq, bq, wk, bk, wv, bv, gamma, *, mxu_dtype=jnp.bfloat16):
    """x_nchw: (B, C, H, W) f32.

    Weights use the (squeezed) PyTorch 1x1-conv layout:
      wq, wk: (C//8, C);  bq, bk: (C//8,);  wv: (C, C);  bv: (C,);  gamma: (1, 1).
    """
    B, C, H, W = x_nchw.shape
    N = H * W
    C8 = C // 8
    C8p = max(8, _round_up(C8, 8))          # sublane-aligned q/k channel count

    # ---- tiny weight prep (outside the kernel) ------------------------------
    # Zero-pad q/k projections: padded output channels have zero weight & bias
    # so they contribute exactly 0 to the energy.
    wq_p = jnp.zeros((C8p, C), jnp.float32).at[:C8].set(wq).astype(mxu_dtype)
    wk_p = jnp.zeros((C8p, C), jnp.float32).at[:C8].set(wk).astype(mxu_dtype)
    bq_p = jnp.zeros((C8p, 1), jnp.float32).at[:C8, 0].set(bq)
    bk_p = jnp.zeros((C8p, 1), jnp.float32).at[:C8, 0].set(bk)
    # Augment W_v with an all-ones output row so the second matmul also emits
    # the softmax denominator (row C of its result) with i on lanes.
    wv_a = jnp.concatenate([wv, jnp.zeros((1, C), jnp.float32)], axis=0).astype(mxu_dtype)
    bv_a = jnp.concatenate([bv, jnp.ones((1,), jnp.float32)]).reshape(C + 1, 1)

    x_cn = x_nchw.reshape(B, C, N)          # pure reshape: no HBM transpose

    flops = B * (2 * C * N * (2 * C8p + C + 1)
                 + 2 * C8p * N * N + 2 * (C + 1) * N * N)
    cost = pl.CostEstimate(
        flops=flops,
        transcendentals=B * (N * N + N),
        bytes_accessed=4 * (2 * B * C * N + 2 * C8p * (C + 1) + (C + 1) * (C + 1) + 1),
    )

    kernel = functools.partial(sr_kernel, mxu_dtype=mxu_dtype)

    out_cn = pl.pallas_call(
        kernel,
        out_shape=jax.ShapeDtypeStruct((B, C, N), jnp.float32),
        grid_spec=pltpu.PrefetchScalarGridSpec(
            num_scalar_prefetch=0,
            grid=(B,),
            in_specs=[
                pl.BlockSpec((1, C, N), lambda b: (b, 0, 0)),        # x (lane-dense N)
                pl.BlockSpec((C8p, C), lambda b: (0, 0)),            # Wq (padded)
                pl.BlockSpec((C8p, 1), lambda b: (0, 0)),            # bq
                pl.BlockSpec((C8p, C), lambda b: (0, 0)),            # Wk (padded)
                pl.BlockSpec((C8p, 1), lambda b: (0, 0)),            # bk
                pl.BlockSpec((C + 1, C), lambda b: (0, 0)),          # Wv (augmented)
                pl.BlockSpec((C + 1, 1), lambda b: (0, 0)),          # bv (augmented)
                pl.BlockSpec(memory_space=pltpu.MemorySpace.SMEM),   # gamma
            ],
            out_specs=pl.BlockSpec((1, C, N), lambda b: (b, 0, 0)),
        ),
        compiler_params=pltpu.CompilerParams(
            dimension_semantics=("parallel",)),       # batch across TCs on v7x
        cost_estimate=cost,
    )(x_cn, wq_p, bq_p, wk_p, bk_p, wv_a, bv_a, gamma)

    return out_cn.reshape(B, C, H, W)


def sr_reference(x, wq, bq, wk, bk, wv, bv, gamma):
    """Pure-JAX mirror of the PyTorch forward (NCHW), for validation."""
    B, C, H, W = x.shape
    N = H * W
    xf = x.reshape(B, C, N)                                            # (B, C, N)
    q = jnp.einsum('oc,bcn->bon', wq, xf) + bq.reshape(1, -1, 1)       # (B, C8, N)
    k = jnp.einsum('oc,bcn->bon', wk, xf) + bk.reshape(1, -1, 1)       # (B, C8, N)
    v = jnp.einsum('oc,bcn->bon', wv, xf) + bv.reshape(1, -1, 1)       # (B, C, N)
    energy = jnp.einsum('boi,boj->bij', q, k)                          # (B, N, N)
    attn = jax.nn.softmax(energy, axis=-1)
    out = jnp.einsum('bcj,bij->bci', v, attn)                          # (B, C, N)
    return x + gamma.reshape(()) * out.reshape(B, C, H, W)


if __name__ == "__main__":
    B, C, H, W = 2, 32, 16, 16        # in_dim = 32 (divisible by 8), N = 256 >= 128
    C8 = C // 8

    key = jax.random.PRNGKey(0)
    kx, kwq, kbq, kwk, kbk, kwv, kbv = jax.random.split(key, 7)

    x = jax.random.normal(kx, (B, C, H, W), dtype=jnp.float32)

    # PyTorch-layout parameters (C_out, C_in) for the 1x1 convs.
    wq = 0.1 * jax.random.normal(kwq, (C8, C), dtype=jnp.float32)
    bq = 0.1 * jax.random.normal(kbq, (C8,), dtype=jnp.float32)
    wk = 0.1 * jax.random.normal(kwk, (C8, C), dtype=jnp.float32)
    bk = 0.1 * jax.random.normal(kbk, (C8,), dtype=jnp.float32)
    wv = 0.1 * jax.random.normal(kwv, (C, C), dtype=jnp.float32)
    bv = 0.1 * jax.random.normal(kbv, (C,), dtype=jnp.float32)
    # nn.Parameter(torch.zeros(1)) in the module; nonzero here so the attention
    # path is exercised.
    gamma = jnp.full((1, 1), 0.5, dtype=jnp.float32)

    ref = sr_reference(x, wq, bq, wk, bk, wv, bv, gamma)

    # Exact-math path (f32 MXU operands): tight tolerance.
    out_f32 = jax.block_until_ready(
        sr_forward(x, wq, bq, wk, bk, wv, bv, gamma, mxu_dtype=jnp.float32))
    assert out_f32.shape == (B, C, H, W)
    assert jnp.allclose(out_f32, ref, rtol=5e-3, atol=5e-3), (
        float(jnp.max(jnp.abs(out_f32 - ref))))

    # Perf path (bf16 MXU operands, f32 accumulation): bf16-appropriate tolerance.
    out_bf16 = jax.block_until_ready(
        sr_forward(x, wq, bq, wk, bk, wv, bv, gamma, mxu_dtype=jnp.bfloat16))
    assert out_bf16.shape == (B, C, H, W)
    assert jnp.allclose(out_bf16, ref, rtol=1e-1, atol=1e-1), (
        float(jnp.max(jnp.abs(out_bf16 - ref))))

    print("KERNEL_OK")
</pallas_src>

<mosaic_0001>
module attributes {stable_mosaic.version = 11 : i64} {
  func.func @sr_kernel(%arg0: i32, %arg1: memref<1x32x256xf32, #tpu.memory_space<vmem>>, %arg2: memref<8x32xf32, #tpu.memory_space<vmem>>, %arg3: memref<8x1xf32, #tpu.memory_space<vmem>>, %arg4: memref<8x32xf32, #tpu.memory_space<vmem>>, %arg5: memref<8x1xf32, #tpu.memory_space<vmem>>, %arg6: memref<33x32xf32, #tpu.memory_space<vmem>>, %arg7: memref<33x1xf32, #tpu.memory_space<vmem>>, %arg8: memref<1x1xf32, #tpu.memory_space<smem>>, %arg9: memref<1x32x256xf32, #tpu.memory_space<vmem>>) attributes {dimension_semantics = [#tpu.dimension_semantics<parallel>], iteration_bounds = array<i64: 2>, scalar_prefetch = 0 : i64, scratch_operands = 0 : i64, tpu.core_type = #tpu.core_type<tc>, window_params = [{transform_indices = @transform_0, window_bounds = array<i64: 1, 32, 256>}, {pipeline_mode = #tpu.pipeline_mode<synchronous>, transform_indices = @transform_1, window_bounds = array<i64: 8, 32>}, {pipeline_mode = #tpu.pipeline_mode<synchronous>, transform_indices = @transform_2, window_bounds = array<i64: 8, 1>}, {pipeline_mode = #tpu.pipeline_mode<synchronous>, transform_indices = @transform_3, window_bounds = array<i64: 8, 32>}, {pipeline_mode = #tpu.pipeline_mode<synchronous>, transform_indices = @transform_4, window_bounds = array<i64: 8, 1>}, {pipeline_mode = #tpu.pipeline_mode<synchronous>, transform_indices = @transform_5, window_bounds = array<i64: 33, 32>}, {pipeline_mode = #tpu.pipeline_mode<synchronous>, transform_indices = @transform_6, window_bounds = array<i64: 33, 1>}, {transform_indices = @transform_7, window_bounds = array<i64: 1, 1>}, {transform_indices = @transform_8, window_bounds = array<i64: 1, 32, 256>}]} {
    %c0 = arith.constant 0 : index
    %c0_0 = arith.constant 0 : index
    %c0_1 = arith.constant 0 : index
    %0 = vector.load %arg1[%c0, %c0_0, %c0_1] : memref<1x32x256xf32, #tpu.memory_space<vmem>>, vector<1x32x256xf32>
    %1 = vector.shape_cast %0 : vector<1x32x256xf32> to vector<32x256xf32>
    %c0_2 = arith.constant 0 : index
    %c0_3 = arith.constant 0 : index
    %2 = vector.load %arg2[%c0_2, %c0_3] : memref<8x32xf32, #tpu.memory_space<vmem>>, vector<8x32xf32>
    %cst = arith.constant dense<0.000000e+00> : vector<8x256xf32>
    %3 = tpu.matmul %2, %1, %cst {dimension_numbers = #tpu.dot_dimension_numbers<[1], [0], [0], [1], [0, 0, 1, 1], [], []>} : vector<8x32xf32>, vector<32x256xf32>, vector<8x256xf32> -> vector<8x256xf32>
    %c0_4 = arith.constant 0 : index
    %c0_5 = arith.constant 0 : index
    %4 = vector.load %arg3[%c0_4, %c0_5] : memref<8x1xf32, #tpu.memory_space<vmem>>, vector<8x1xf32>
    %5 = vector.broadcast %4 : vector<8x1xf32> to vector<8x256xf32>
    %6 = arith.addf %3, %5 : vector<8x256xf32>
    %c0_6 = arith.constant 0 : index
    %c0_7 = arith.constant 0 : index
    %7 = vector.load %arg4[%c0_6, %c0_7] : memref<8x32xf32, #tpu.memory_space<vmem>>, vector<8x32xf32>
    %cst_8 = arith.constant dense<0.000000e+00> : vector<8x256xf32>
    %8 = tpu.matmul %7, %1, %cst_8 {dimension_numbers = #tpu.dot_dimension_numbers<[1], [0], [0], [1], [0, 0, 1, 1], [], []>} : vector<8x32xf32>, vector<32x256xf32>, vector<8x256xf32> -> vector<8x256xf32>
    %c0_9 = arith.constant 0 : index
    %c0_10 = arith.constant 0 : index
    %9 = vector.load %arg5[%c0_9, %c0_10] : memref<8x1xf32, #tpu.memory_space<vmem>>, vector<8x1xf32>
    %10 = vector.broadcast %9 : vector<8x1xf32> to vector<8x256xf32>
    %11 = arith.addf %8, %10 : vector<8x256xf32>
    %c0_11 = arith.constant 0 : index
    %c0_12 = arith.constant 0 : index
    %12 = vector.load %arg6[%c0_11, %c0_12] : memref<33x32xf32, #tpu.memory_space<vmem>>, vector<33x32xf32>
    %cst_13 = arith.constant dense<0.000000e+00> : vector<33x256xf32>
    %13 = tpu.matmul %12, %1, %cst_13 {dimension_numbers = #tpu.dot_dimension_numbers<[1], [0], [0], [1], [0, 0, 1, 1], [], []>} : vector<33x32xf32>, vector<32x256xf32>, vector<33x256xf32> -> vector<33x256xf32>
    %c0_14 = arith.constant 0 : index
    %c0_15 = arith.constant 0 : index
    %14 = vector.load %arg7[%c0_14, %c0_15] : memref<33x1xf32, #tpu.memory_space<vmem>>, vector<33x1xf32>
    %15 = vector.broadcast %14 : vector<33x1xf32> to vector<33x256xf32>
    %16 = arith.addf %13, %15 : vector<33x256xf32>
    %cst_16 = arith.constant dense<0.000000e+00> : vector<256x256xf32>
    %17 = tpu.matmul %6, %11, %cst_16 {dimension_numbers = #tpu.dot_dimension_numbers<[0], [0], [1], [1], [0, 1, 1, 1], [], []>} : vector<8x256xf32>, vector<8x256xf32>, vector<256x256xf32> -> vector<256x256xf32>
    %cst_17 = arith.constant dense<0xFF800000> : vector<256xf32>
    %18 = vector.multi_reduction <maximumf>, %17, %cst_17 [1] : vector<256x256xf32> to vector<256xf32>
    %19 = vector.shape_cast %18 : vector<256xf32> to vector<256x1xf32>
    %20 = vector.broadcast %19 : vector<256x1xf32> to vector<256x256xf32>
    %21 = arith.subf %17, %20 : vector<256x256xf32>
    %22 = math.exp %21 : vector<256x256xf32>
    %cst_18 = arith.constant dense<0.000000e+00> : vector<33x256xf32>
    %23 = tpu.matmul %16, %22, %cst_18 {dimension_numbers = #tpu.dot_dimension_numbers<[1], [1], [0], [0], [0, 0, 1, 0], [], []>} : vector<33x256xf32>, vector<256x256xf32>, vector<33x256xf32> -> vector<33x256xf32>
    %24 = vector.extract_strided_slice %23 {offsets = [0, 0], sizes = [32, 256], strides = [1, 1]} : vector<33x256xf32> to vector<32x256xf32>
    %25 = vector.extract_strided_slice %23 {offsets = [32, 0], sizes = [1, 256], strides = [1, 1]} : vector<33x256xf32> to vector<1x256xf32>
    %26 = tpu.reciprocal %25 {approx = true} : vector<1x256xf32> -> vector<1x256xf32>
    %c0_19 = arith.constant 0 : index
    %c0_20 = arith.constant 0 : index
    %27 = memref.load %arg8[%c0_19, %c0_20] : memref<1x1xf32, #tpu.memory_space<smem>>
    %28 = vector.broadcast %26 : vector<1x256xf32> to vector<32x256xf32>
    %29 = arith.mulf %24, %28 : vector<32x256xf32>
    %30 = vector.broadcast %27 : f32 to vector<32x256xf32>
    %31 = arith.mulf %30, %29 : vector<32x256xf32>
    %32 = arith.addf %1, %31 : vector<32x256xf32>
    %c0_21 = arith.constant 0 : index
    %c0_22 = arith.constant 0 : index
    %c0_23 = arith.constant 0 : index
    %33 = vector.load %arg9[%c0_21, %c0_22, %c0_23] : memref<1x32x256xf32, #tpu.memory_space<vmem>>, vector<1x32x256xf32>
    %34 = vector.shape_cast %33 : vector<1x32x256xf32> to vector<32x256xf32>
    %35 = vector.shape_cast %32 : vector<32x256xf32> to vector<1x32x256xf32>
    tpu.vector_store %arg9[%c0_21, %c0_22, %c0_23], %35 {strides = array<i32>} : memref<1x32x256xf32, #tpu.memory_space<vmem>>, vector<1x32x256xf32>,
    return
  }
  func.func @transform_0(%arg0: i32) -> (i32, i32, i32) {
    %c0_i32 = arith.constant 0 : i32
    %c0_i32_0 = arith.constant 0 : i32
    %c0_i32_1 = arith.constant 0 : i32
    return %arg0, %c0_i32, %c0_i32_0 : i32, i32, i32
  }
  func.func @transform_1(%arg0: i32) -> (i32, i32) {
    %c0_i32 = arith.constant 0 : i32
    %c0_i32_0 = arith.constant 0 : i32
    %c0_i32_1 = arith.constant 0 : i32
    return %c0_i32, %c0_i32_0 : i32, i32
  }
  func.func @transform_2(%arg0: i32) -> (i32, i32) {
    %c0_i32 = arith.constant 0 : i32
    %c0_i32_0 = arith.constant 0 : i32
    %c0_i32_1 = arith.constant 0 : i32
    return %c0_i32, %c0_i32_0 : i32, i32
  }
  func.func @transform_3(%arg0: i32) -> (i32, i32) {
    %c0_i32 = arith.constant 0 : i32
    %c0_i32_0 = arith.constant 0 : i32
    %c0_i32_1 = arith.constant 0 : i32
    return %c0_i32, %c0_i32_0 : i32, i32
  }
  func.func @transform_4(%arg0: i32) -> (i32, i32) {
    %c0_i32 = arith.constant 0 : i32
    %c0_i32_0 = arith.constant 0 : i32
    %c0_i32_1 = arith.constant 0 : i32
    return %c0_i32, %c0_i32_0 : i32, i32
  }
  func.func @transform_5(%arg0: i32) -> (i32, i32) {
    %c0_i32 = arith.constant 0 : i32
    %c0_i32_0 = arith.constant 0 : i32
    %c0_i32_1 = arith.constant 0 : i32
    return %c0_i32, %c0_i32_0 : i32, i32
  }
  func.func @transform_6(%arg0: i32) -> (i32, i32) {
    %c0_i32 = arith.constant 0 : i32
    %c0_i32_0 = arith.constant 0 : i32
    %c0_i32_1 = arith.constant 0 : i32
    return %c0_i32, %c0_i32_0 : i32, i32
  }
  func.func @transform_7(%arg0: i32) -> (i32, i32) {
    %c0_i32 = arith.constant 0 : i32
    %c0_i32_0 = arith.constant 0 : i32
    %c0_i32_1 = arith.constant 0 : i32
    return %c0_i32, %c0_i32_0 : i32, i32
  }
  func.func @transform_8(%arg0: i32) -> (i32, i32, i32) {
    %c0_i32 = arith.constant 0 : i32
    %c0_i32_0 = arith.constant 0 : i32
    %c0_i32_1 = arith.constant 0 : i32
    return %arg0, %c0_i32, %c0_i32_0 : i32, i32, i32
  }
}

</mosaic_0001>

<bundles_post_ra>
// kernel: tpu_custom_call.1
= control target key start
LH: loop header
LB: loop body
LE: loop exit
PB: predicated region body
PF: predicated region fallthrough
CT: control target
= control target key end

     0   :  { %s2615_s0 = inlined_call_operand.vmem [shape: f32[2,32,256], index: 0, kind: input, shape index: {}]   ;;  %s2616_s1 = inlined_call_operand.hbm [shape: f32[8,32], index: 1, kind: input, shape index: {}]   ;;  %s2617_s2 = inlined_call_operand.vmem [shape: f32[8,1], index: 2, kind: input, shape index: {}]   ;;  %s2618_s3 = inlined_call_operand.hbm [shape: f32[8,32], index: 3, kind: input, shape index: {}]   ;;  %s2619_s4 = inlined_call_operand.vmem [shape: f32[8,1], index: 4, kind: input, shape index: {}]   ;;  %s2620_s5 = inlined_call_operand.vmem [shape: f32[33,32], index: 5, kind: input, shape index: {}]   ;;  %s2621_s6 = inlined_call_operand.vmem [shape: f32[33,1], index: 6, kind: input, shape index: {}]   ;;  %s2622_s7 = inlined_call_operand.<no memory space> [shape: f32[1,1], index: 7, kind: input, shape index: {}]   ;;  %s2623_s8 = inlined_call_operand.hbm [shape: f32[2,32,256], index: 8, kind: output, shape index: {}]  }
   0x1   :  { %13 = sst [smem:[#allocation2]] %s2622_s7 }
   0x2   :  { %14 = vsyncpa [#allocation4], 0 }
   0x3   :  { %15 = vsyncpa [#allocation7], 0 }
   0x4   :  { %16 = vsyncpa [#allocation5], 0 }
   0x5   :  { %18 = vsyncpa [#allocation5 + $0x1], 0  ;;  %s1986_s29 = smov 0   ;;  %s1988_s30 = smov 0  }
   0x6   :  { %s1990_s9 = smov 0   ;;  %s1992_s10 = smov 0  }
   0x7 LB: > { %s2007_s7 = sadd.s32 4294967295, %s1931_s10   ;;  %s1499_s11 = sadd.s32 4294967294, %s1931_s10   ;;  %s1931_s10 = sphi %s1992_s10, %s2705_s10   ;;  %s1927_s9 = sphi %s1990_s9, %s2704_s9   ;;  %s1923_s30 = sphi %s1988_s30, %s2703_s30   ;;  %s1919_s29 = sphi %s1986_s29, %s2702_s29  }
   0x8   : > { %s2011_s12 = sadd.s32 1, %s1931_s10   ;;  %s204_s13 = sadd.s32 1, %s1927_s9 }
   0x9   : > { %s201_s14 = ssub.s32 %s1931_s10, %s2011_s12  ;;  %p214_p0 = scmp.ne.s32.totalorder %s1927_s9, %s1923_s30 }
   0xa   : > { %p202_p1 = scmp.eq.s32.totalorder %s201_s14, 0  ;;  %p215_p2 = scmp.eq.s32.totalorder %s2007_s7, 1 }
   0xb   : > { %p220_p3 = scmp.ne.s32.totalorder %s1923_s30, %s1919_s29  ;;  %p221_p4 = scmp.eq.s32.totalorder %s1499_s11, 1 }
   0xc   : > { %s2022_s15 = scalar_select %p202_p1, %s1927_s9, %s204_s13  }
   0xd   : > { %p2024_p5 = por %p215_p2, %p214_p0  ;;  %p2028_p6 = por %p221_p4, %p220_p3 }
   0xe   : > { %p1500_p7 = scmp.ge.s32.totalorder %s1931_s10, 1  ;;  %p228_p8 = scmp.lt.s32.totalorder %s1931_s10, 3 }
   0xf   : > { %p1616_p9 = scmp.eq.s32.totalorder %s2007_s7, 0  ;;  %s240_s21 = sshll.u32 %s2616_s1, 4  ;;  %s241_s21 = int_to_ptr.hbm [resolvable:$true] %s240_s21 }
  0x10   : > { %p2035_p10 = pnand %p1500_p7, %p228_p8  ;;  %s1933_s22 = smov [#allocation3]  }
  0x11   : > { %s242_s23 = sshll.u32 %s1933_s22, 4  ;;  %s255_s26 = sshll.u32 %s2618_s3, 4  ;;  %s243_s23 = int_to_ptr.vmem [resolvable:$true] %s242_s23  ;;  %s256_s26 = int_to_ptr.hbm [resolvable:$true] %s255_s26 }
  0x12   : > { %p1605_p11 = pneg %p2035_p10  ;;  %s1934_s27 = smov [#allocation6]  }
  0x13   : > { %s257_s28 = sshll.u32 %s1934_s27, 4  ;;  %290 = sbr.rel (%p2035_p10) target bundleno = 1105 (0x451), region = 52  ;;  %s258_s28 = int_to_ptr.vmem [resolvable:$true] %s257_s28 }
  0x14   : > { %p1606_p12 = pnand %p1616_p9, %p1605_p11 }
  0x16   : > { %1608 = dma.hbm_to_vmem [thread:$0]  (!%p1606_p12), %s241_s21, 128, %s243_s23, [#allocation4]  }
  0x17   : > { %1611 = dma.hbm_to_vmem [thread:$0]  (!%p1606_p12), %s256_s26, 128, %s258_s28, [#allocation7]  }
  0x18   : > { %1906 = dma.done.wait (%p1616_p9), [#allocation4], 128  }
  0x19   : > { %1908 = vsyncadd (%p1616_p9), [#allocation4], 4294967168 }
  0x1a   : > { %1910 = dma.done.wait (%p1616_p9), [#allocation7], 128  }
  0x1b   : > { %1912 = vsyncadd (%p1616_p9), [#allocation7], 4294967168  ;;  %p330_p13 = scmp.lt.s32.totalorder %s2007_s7, 1  ;;  %v1935_v0 = vmov 0   ;;  %v344_v3 = vld [vmem:[%s2617_s2] sm:$0xff]  ;;  %vm350_vm0 = vcmask 261120  }
  0x1c   : > { %1659 = vset.pattern.permute.xlu0 %v1935_v0  ;;  %1660 = vset.pattern.permute.xlu2 %v1935_v0  ;;  %v343_v10 = vld [vmem:[#allocation3] sm:$0xff]  ;;  %v394_v12 = vld [vmem:[#allocation6] sm:$0xff]  ;;  %vm622_vm1 = vcmask 64512   ;;  %s1363_s14 = sld [smem:[#allocation2]]  ;;  %s327_s18 = sand.u32 1, %s1923_s30  }
  0x1d   : > { %s331_s11 = scalar_select %p330_p13, %s2007_s7, 1  ;;  %347 = vperm.xlu0 %1659, %v344_v3   ;;  %v395_v11 = vld [vmem:[%s2619_s4] sm:$0xff] }
  0x1e   : > { %v449_v13 = vld [vmem:[%s2621_s6] sm:$0xff]  ;;  %s1507_s20 = sshll.u32 %s327_s18, 6  ;;  %s1594_s22 = sshll.u32 %s2007_s7, 6 }
  0x1f   : > { %s1593_s13 = sshll.u32 %s331_s11, 6  ;;  %v444_v14 = vld [vmem:[%s2620_s5] sm:$0xff]  ;;  %s2567_s21 = scalar_lea.vmem [#allocation8], %s1507_s20 }
  0x20   : > { %s2064_s19 = scalar_lea.vmem %s2615_s0, %s1593_s13  ;;  %s1411_s25 = scalar_lea.hbm %s2623_s8, %s1594_s22 }
  0x21   : > { %v341_v1 = vld [vmem:[%s2064_s19 + $0x30] sm:$0xff]  ;;  %v342_v2 = vld [vmem:[%s2064_s19 + $0x38] sm:$0xff]  ;;  %v339_v4 = vld [vmem:[%s2064_s19 + $0x20] sm:$0xff]  ;;  %s1412_s7 = sshll.u32 %s2567_s21, 4  ;;  %s1414_s26 = sshll.u32 %s1411_s25, 4  ;;  %s1413_s7 = int_to_ptr.vmem [resolvable:$true] %s1412_s7  ;;  %s1415_s26 = int_to_ptr.hbm [resolvable:$true] %s1414_s26 }
  0x22   : > { %366 = vmatpush.msra.mxu0 %v341_v1  ;;  %386 = vmatpush.msra.mxu1 %v342_v2  ;;  %v340_v5 = vld [vmem:[%s2064_s19 + $0x28] sm:$0xff]  ;;  %v337_v6 = vld [vmem:[%s2064_s19 + $0x10] sm:$0xff]  ;;  %v338_v7 = vld [vmem:[%s2064_s19 + $0x18] sm:$0xff]  ;;  %s1400_s27 = scalar_lea.sflag [#allocation5], %s327_s18  ;;  %s1875_s28 = sshra.s32 %s1415_s26, 4  ;;  %s1876_s28 = int_to_ptr.hbm [resolvable:$true] %s1875_s28 }
  0x23   : > { %v335_v8 = vld [vmem:[%s2064_s19] sm:$0xff]  ;;  %v336_v9 = vld [vmem:[%s2064_s19 + $0x8] sm:$0xff]  ;;  %s1877_s11 = scalar_lea.hbm %s1876_s28, 64  ;;  %p1882_p3 = scmp.lt.s32.totalorder %s1876_s28, %s2623_s8 }
  0x24   : > { %367 = vmatpush.msra.mxu0 %v339_v4  ;;  %387 = vmatpush.msra.mxu1 %v340_v5  ;;  %p1878_p0 = scmp.ne.s32.totalorder %s1876_s28, %s1877_s11 }
  0x25   : > { %398 = vperm.xlu0 %1659, %v395_v11  }
  0x26   : > { %368 = vmatpush.msra.mxu0 %v337_v6  ;;  %388 = vmatpush.msra.mxu1 %v338_v7  ;;  %p1879_p1 = pnand %p1878_p0, %p2024_p5 }
  0x28   : > { %369 = vmatpush.msra.mxu0 %v335_v8  ;;  %389 = vmatpush.msra.mxu1 %v336_v9  ;;  %p1880_p2 = pneg %p1879_p1 }
  0x29   : > { %1510 = vmatmul.msk.f32.vlgmr.msra.gmra.mxu0 %vm350_vm0, %v343_v10  ;;  %1511 = vmatmul.msk.f32.vlgmr.msra.gmra.mxu1 %vm350_vm0, %v343_v10 }
  0x2a   : > { %416 = vmatpush.msrb.mxu0 %v341_v1  ;;  %436 = vmatpush.msrb.mxu1 %v342_v2 }
  0x2c   : > { %417 = vmatpush.msrb.mxu0 %v339_v4  ;;  %437 = vmatpush.msrb.mxu1 %v340_v5 }
  0x2d   : > { %456 = vperm.xlu0 %1659, %v449_v13  }
  0x2e   : > { %418 = vmatpush.msrb.mxu0 %v337_v6  ;;  %438 = vmatpush.msrb.mxu1 %v338_v7 }
  0x30   : > { %419 = vmatpush.msrb.mxu0 %v335_v8  ;;  %439 = vmatpush.msrb.mxu1 %v336_v9 }
  0x31   : > { %1512 = vmatmul.msk.f32.vlgmr.msrb.gmra.mxu0 %vm350_vm0, %v394_v12  ;;  %1513 = vmatmul.msk.f32.vlgmr.msrb.gmra.mxu1 %vm350_vm0, %v394_v12 }
  0x32   : > { %506 = vmatpush.msra.mxu0 %v341_v1  ;;  %538 = vmatpush.msra.mxu1 %v342_v2 }
  0x34   : > { %507 = vmatpush.msra.mxu0 %v339_v4  ;;  %539 = vmatpush.msra.mxu1 %v340_v5 }
  0x36   : > { %508 = vmatpush.msra.mxu0 %v337_v6  ;;  %540 = vmatpush.msra.mxu1 %v338_v7 }
  0x38   : > { %509 = vmatpush.msra.mxu0 %v335_v8  ;;  %541 = vmatpush.msra.mxu1 %v336_v9 }
  0x39   : > { %1514 = vmatmul.msk.f32.vlgmr.msra.gmra.mxu0 %vm350_vm0, %v444_v14  ;;  %1519 = vmatmul.msk.f32.vlgmr.msra.gmra.mxu1 %vm350_vm0, %v444_v14 }
  0x8f   : > { %v348_v15 = vpop.permute.xlu0 %347 }
  0x97   : > { %v399_v20 = vpop.permute.xlu0 %398 }
  0xa6   : > { %v371_v16 = vpop.f32.mrf.mxu0  ;;  %v391_v17 = vpop.f32.mrf.mxu1 }
  0xa7   : > { %v392_v18 = vadd.f32 %v391_v17, %v348_v15  ;;  %v372_v19 = vadd.f32 %v371_v16, %v348_v15 }
  0xa9   : > { %558 = vxpose.xlu1.b32.start.end [1/1] (short) %v372_v19, 128 }
  0xae   : > { %v421_v21 = vpop.f32.mrf.mxu0  ;;  %v441_v22 = vpop.f32.mrf.mxu1 }
  0xaf   : > { %v422_v23 = vadd.f32 %v421_v21, %v399_v20  ;;  %v442_v24 = vadd.f32 %v441_v22, %v399_v20 }
  0xb1   : > { %734 = vmatpush.msra.mxu2 %v422_v23  ;;  %847 = vmatpush.msra.mxu3 %v442_v24 }
 0x129   : > { %590 = vxpose.xlu1.b32.start.end [1/1] (short) %v392_v18, 128 }
 0x14d   : > { %v574_v25 = vpop.trf.xlu1 }
 0x14e   : > { %1524 = vmatmul.msk.f32.vlgmr.msra.gmra.mxu2 %vm622_vm1, %v574_v25  ;;  %1556 = vmatmul.msk.f32.vlgmr.msra.gmra.mxu3 %vm622_vm1, %v574_v25 }
 0x155   : > { %v575_v26 = vpop.trf.xlu1 }
 0x156   : > { %1525 = vmatmul.msk.f32.gmra.mxu2 %vm622_vm1, %v575_v26  ;;  %1557 = vmatmul.msk.f32.gmra.mxu3 %vm622_vm1, %v575_v26 }
 0x15d   : > { %v576_v27 = vpop.trf.xlu1 }
 0x15e   : > { %1526 = vmatmul.msk.f32.gmra.mxu2 %vm622_vm1, %v576_v27  ;;  %1558 = vmatmul.msk.f32.gmra.mxu3 %vm622_vm1, %v576_v27 }
 0x165   : > { %v577_v28 = vpop.trf.xlu1 }
 0x166   : > { %1527 = vmatmul.msk.f32.gmra.mxu2 %vm622_vm1, %v577_v28  ;;  %1559 = vmatmul.msk.f32.gmra.mxu3 %vm622_vm1, %v577_v28 }
 0x16d   : > { %v578_v29 = vpop.trf.xlu1 }
 0x16e   : > { %1528 = vmatmul.msk.f32.gmra.mxu2 %vm622_vm1, %v578_v29  ;;  %1560 = vmatmul.msk.f32.gmra.mxu3 %vm622_vm1, %v578_v29 }
 0x175   : > { %v579_v30 = vpop.trf.xlu1 }
 0x176   : > { %1529 = vmatmul.msk.f32.gmra.mxu2 %vm622_vm1, %v579_v30  ;;  %1561 = vmatmul.msk.f32.gmra.mxu3 %vm622_vm1, %v579_v30 }
 0x17d   : > { %v580_v31 = vpop.trf.xlu1 }
 0x17e   : > { %1530 = vmatmul.msk.f32.gmra.mxu2 %vm622_vm1, %v580_v31  ;;  %1562 = vmatmul.msk.f32.gmra.mxu3 %vm622_vm1, %v580_v31 }
 0x185   : > { %v581_v32 = vpop.trf.xlu1 }
 0x186   : > { %1531 = vmatmul.msk.f32.gmra.mxu2 %vm622_vm1, %v581_v32  ;;  %1563 = vmatmul.msk.f32.gmra.mxu3 %vm622_vm1, %v581_v32 }
 0x18d   : > { %v582_v33 = vpop.trf.xlu1 }
 0x18e   : > { %1532 = vmatmul.msk.f32.gmra.mxu2 %vm622_vm1, %v582_v33  ;;  %1564 = vmatmul.msk.f32.gmra.mxu3 %vm622_vm1, %v582_v33 }
 0x195   : > { %v583_v34 = vpop.trf.xlu1 }
 0x196   : > { %1533 = vmatmul.msk.f32.gmra.mxu2 %vm622_vm1, %v583_v34  ;;  %1565 = vmatmul.msk.f32.gmra.mxu3 %vm622_vm1, %v583_v34 }
 0x19d   : > { %v584_v35 = vpop.trf.xlu1 }
 0x19e   : > { %1534 = vmatmul.msk.f32.gmra.mxu2 %vm622_vm1, %v584_v35  ;;  %1566 = vmatmul.msk.f32.gmra.mxu3 %vm622_vm1, %v584_v35 }
 0x1a5   : > { %v585_v36 = vpop.trf.xlu1 }
 0x1a6   : > { %1535 = vmatmul.msk.f32.gmra.mxu2 %vm622_vm1, %v585_v36  ;;  %1567 = vmatmul.msk.f32.gmra.mxu3 %vm622_vm1, %v585_v36 }
 0x1ad   : > { %v586_v37 = vpop.trf.xlu1 }
 0x1ae   : > { %1536 = vmatmul.msk.f32.gmra.mxu2 %vm622_vm1, %v586_v37  ;;  %1568 = vmatmul.msk.f32.gmra.mxu3 %vm622_vm1, %v586_v37 }
 0x1b5   : > { %v587_v38 = vpop.trf.xlu1 }
 0x1b6   : > { %1537 = vmatmul.msk.f32.gmra.mxu2 %vm622_vm1, %v587_v38  ;;  %1569 = vmatmul.msk.f32.gmra.mxu3 %vm622_vm1, %v587_v38 }
 0x1bd   : > { %v588_v39 = vpop.trf.xlu1 }
 0x1be   : > { %1538 = vmatmul.msk.f32.gmra.mxu2 %vm622_vm1, %v588_v39  ;;  %1570 = vmatmul.msk.f32.gmra.mxu3 %vm622_vm1, %v588_v39 }
 0x1c5   : > { %v589_v40 = vpop.trf.xlu1 }
 0x1c6   : > { %1539 = vmatmul.msk.f32.gmra.mxu2 %vm622_vm1, %v589_v40  ;;  %1571 = vmatmul.msk.f32.gmra.mxu3 %vm622_vm1, %v589_v40 }
 0x1cd   : > { %v606_v41 = vpop.trf.xlu1 }
 0x1ce   : > { %1540 = vmatmul.msk.f32.gmra.mxu2 %vm622_vm1, %v606_v41  ;;  %1572 = vmatmul.msk.f32.gmra.mxu3 %vm622_vm1, %v606_v41 }
 0x1d1   : > { %v2126_v42 = vpop.f32.mrf.mxu2  ;;  %v2128_v43 = vpop.f32.mrf.mxu3 }
 0x1d2   : > { %v945_v44 = vmax.f32 %v2126_v42, %v2128_v43 }
 0x1d4   : > { %946 = vmax.xlane.f32.xlu2 %v945_v44 }
 0x1d5   : > { %v607_v45 = vpop.trf.xlu1 }
 0x1d6   : > { %1541 = vmatmul.msk.f32.gmra.mxu2 %vm622_vm1, %v607_v45  ;;  %1573 = vmatmul.msk.f32.gmra.mxu3 %vm622_vm1, %v607_v45 }
 0x1d9   : > { %v2134_v46 = vpop.f32.mrf.mxu2  ;;  %v2136_v47 = vpop.f32.mrf.mxu3 }
 0x1da   : > { %v948_v48 = vmax.f32 %v2134_v46, %v2136_v47 }
 0x1dc   : > { %949 = vmax.xlane.f32.xlu2 %v948_v48 }
 0x1dd   : > { %v608_v49 = vpop.trf.xlu1 }
 0x1de   : > { %1542 = vmatmul.msk.f32.gmra.mxu2 %vm622_vm1, %v608_v49  ;;  %1574 = vmatmul.msk.f32.gmra.mxu3 %vm622_vm1, %v608_v49 }
 0x1e1   : > { %v2142_v50 = vpop.f32.mrf.mxu2  ;;  %v2144_v51 = vpop.f32.mrf.mxu3 }
 0x1e2   : > { %v951_v52 = vmax.f32 %v2142_v50, %v2144_v51 }
 0x1e4   : > { %952 = vmax.xlane.f32.xlu2 %v951_v52 }
 0x1e5   : > { %v609_v53 = vpop.trf.xlu1 }
 0x1e6   : > { %1543 = vmatmul.msk.f32.gmra.mxu2 %vm622_vm1, %v609_v53  ;;  %1575 = vmatmul.msk.f32.gmra.mxu3 %vm622_vm1, %v609_v53 }
 0x1e9   : > { %v2150_v54 = vpop.f32.mrf.mxu2  ;;  %v2152_v55 = vpop.f32.mrf.mxu3 }
 0x1ea   : > { %v954_v56 = vmax.f32 %v2150_v54, %v2152_v55 }
 0x1ec   : > { %955 = vmax.xlane.f32.xlu2 %v954_v56 }
 0x1ed   : > { %v610_v57 = vpop.trf.xlu1 }
 0x1ee   : > { %1544 = vmatmul.msk.f32.gmra.mxu2 %vm622_vm1, %v610_v57  ;;  %1576 = vmatmul.msk.f32.gmra.mxu3 %vm622_vm1, %v610_v57 }
 0x1f1   : > { %v2158_v58 = vpop.f32.mrf.mxu2  ;;  %v2160_v59 = vpop.f32.mrf.mxu3 }
 0x1f2   : > { %v957_v60 = vmax.f32 %v2158_v58, %v2160_v59 }
 0x1f4   : > { %958 = vmax.xlane.f32.xlu2 %v957_v60 }
 0x1f5   : > { %v611_v61 = vpop.trf.xlu1 }
 0x1f6   : > { %1545 = vmatmul.msk.f32.gmra.mxu2 %vm622_vm1, %v611_v61  ;;  %1577 = vmatmul.msk.f32.gmra.mxu3 %vm622_vm1, %v611_v61 }
 0x1f9   : > { %v2166_v62 = vpop.f32.mrf.mxu2  ;;  %v2168_v63 = vpop.f32.mrf.mxu3 }
 0x1fa   : > { %v960_v0 = vmax.f32 %v2166_v62, %v2168_v63 }
 0x1fc   : > { %961 = vmax.xlane.f32.xlu2 %v960_v0 }
 0x1fd   : > { %v612_v1 = vpop.trf.xlu1 }
 0x1fe   : > { %1546 = vmatmul.msk.f32.gmra.mxu2 %vm622_vm1, %v612_v1  ;;  %1578 = vmatmul.msk.f32.gmra.mxu3 %vm622_vm1, %v612_v1 }
 0x201   : > { %v2174_v2 = vpop.f32.mrf.mxu2  ;;  %v2176_v3 = vpop.f32.mrf.mxu3 }
 0x202   : > { %v963_v4 = vmax.f32 %v2174_v2, %v2176_v3 }
 0x204   : > { %964 = vmax.xlane.f32.xlu0 %v963_v4 }
 0x205   : > { %v613_v5 = vpop.trf.xlu1 }
 0x206   : > { %1547 = vmatmul.msk.f32.gmra.mxu2 %vm622_vm1, %v613_v5  ;;  %1579 = vmatmul.msk.f32.gmra.mxu3 %vm622_vm1, %v613_v5 }
 0x209   : > { %v2182_v6 = vpop.f32.mrf.mxu2  ;;  %v2184_v7 = vpop.f32.mrf.mxu3 }
 0x20a   : > { %v966_v8 = vmax.f32 %v2182_v6, %v2184_v7 }
 0x20c   : > { %967 = vmax.xlane.f32.xlu2 %v966_v8 }
 0x20d   : > { %v614_v9 = vpop.trf.xlu1 }
 0x20e   : > { %1548 = vmatmul.msk.f32.gmra.mxu2 %vm622_vm1, %v614_v9  ;;  %1580 = vmatmul.msk.f32.gmra.mxu3 %vm622_vm1, %v614_v9 }
 0x211   : > { %v2190_v10 = vpop.f32.mrf.mxu2  ;;  %v2192_v11 = vpop.f32.mrf.mxu3 }
 0x212   : > { %v969_v12 = vmax.f32 %v2190_v10, %v2192_v11 }
 0x214   : > { %970 = vmax.xlane.f32.xlu2 %v969_v12 }
 0x215   : > { %v615_v13 = vpop.trf.xlu1 }
 0x216   : > { %1549 = vmatmul.msk.f32.gmra.mxu2 %vm622_vm1, %v615_v13  ;;  %1581 = vmatmul.msk.f32.gmra.mxu3 %vm622_vm1, %v615_v13 }
 0x219   : > { %v2198_v14 = vpop.f32.mrf.mxu2  ;;  %v2200_v15 = vpop.f32.mrf.mxu3 }
 0x21a   : > { %v972_v16 = vmax.f32 %v2198_v14, %v2200_v15 }
 0x21c   : > { %973 = vmax.xlane.f32.xlu2 %v972_v16 }
 0x21d   : > { %v616_v17 = vpop.trf.xlu1 }
 0x21e   : > { %1550 = vmatmul.msk.f32.gmra.mxu2 %vm622_vm1, %v616_v17  ;;  %1582 = vmatmul.msk.f32.gmra.mxu3 %vm622_vm1, %v616_v17 }
 0x221   : > { %v2206_v18 = vpop.f32.mrf.mxu2  ;;  %v2208_v19 = vpop.f32.mrf.mxu3 }
 0x222   : > { %v975_v20 = vmax.f32 %v2206_v18, %v2208_v19 }
 0x224   : > { %976 = vmax.xlane.f32.xlu2 %v975_v20 }
 0x225   : > { %v617_v21 = vpop.trf.xlu1 }
 0x226   : > { %1551 = vmatmul.msk.f32.gmra.mxu2 %vm622_vm1, %v617_v21  ;;  %1583 = vmatmul.msk.f32.gmra.mxu3 %vm622_vm1, %v617_v21 }
 0x229   : > { %v2214_v22 = vpop.f32.mrf.mxu2  ;;  %v2216_v23 = vpop.f32.mrf.mxu3 }
 0x22a   : > { %v978_v24 = vmax.f32 %v2214_v22, %v2216_v23 }
 0x22c   : > { %979 = vmax.xlane.f32.xlu2 %v978_v24 }
 0x22d   : > { %v618_v25 = vpop.trf.xlu1 }
 0x22e   : > { %1552 = vmatmul.msk.f32.gmra.mxu2 %vm622_vm1, %v618_v25  ;;  %1584 = vmatmul.msk.f32.gmra.mxu3 %vm622_vm1, %v618_v25 }
 0x231   : > { %v2222_v26 = vpop.f32.mrf.mxu2  ;;  %v2224_v27 = vpop.f32.mrf.mxu3 }
 0x232   : > { %v981_v28 = vmax.f32 %v2222_v26, %v2224_v27 }
 0x234   : > { %982 = vmax.xlane.f32.xlu2 %v981_v28 }
 0x235   : > { %v619_v29 = vpop.trf.xlu1 }
 0x236   : > { %1553 = vmatmul.msk.f32.gmra.mxu2 %vm622_vm1, %v619_v29  ;;  %1585 = vmatmul.msk.f32.gmra.mxu3 %vm622_vm1, %v619_v29 }
 0x239   : > { %v2230_v30 = vpop.f32.mrf.mxu2  ;;  %v2232_v31 = vpop.f32.mrf.mxu3 }
 0x23a   : > { %v984_v32 = vmax.f32 %v2230_v30, %v2232_v31 }
 0x23c   : > { %985 = vmax.xlane.f32.xlu0 %v984_v32 }
 0x23d   : > { %v620_v33 = vpop.trf.xlu1 }
 0x23e   : > { %1554 = vmatmul.msk.f32.gmra.mxu2 %vm622_vm1, %v620_v33  ;;  %1586 = vmatmul.msk.f32.gmra.mxu3 %vm622_vm1, %v620_v33 }
 0x241   : > { %v2238_v34 = vpop.f32.mrf.mxu2  ;;  %v2240_v35 = vpop.f32.mrf.mxu3 }
 0x242   : > { %v987_v36 = vmax.f32 %v2238_v34, %v2240_v35 }
 0x244   : > { %988 = vmax.xlane.f32.xlu2 %v987_v36 }
 0x245   : > { %v621_v37 = vpop.trf.xlu1 }
 0x246   : > { %1555 = vmatmul.msk.f32.gmra.mxu2 %vm622_vm1, %v621_v37  ;;  %1587 = vmatmul.msk.f32.gmra.mxu3 %vm622_vm1, %v621_v37 }
 0x247   : > { %v2246_v38 = vpop.xlane.xlu2 %946 }
 0x249   : > { %v2248_v39 = vpop.f32.mrf.mxu2  ;;  %v2250_v40 = vpop.f32.mrf.mxu3 }
 0x24a   : > { %v990_v41 = vmax.f32 %v2248_v39, %v2250_v40 }
 0x24c   : > { %991 = vmax.xlane.f32.xlu2 %v990_v41 }
 0x24f   : > { %v2254_v44 = vpop.xlane.xlu2 %949 }
 0x251   : > { %v2256_v45 = vpop.f32.mrf.mxu2  ;;  %v2258_v48 = vpop.f32.mrf.mxu3 }
 0x257   : > { %v2260_v49 = vpop.xlane.xlu2 %952 }
 0x259   : > { %v2262_v52 = vpop.f32.mrf.mxu2  ;;  %v2264_v53 = vpop.f32.mrf.mxu3 }
 0x25f   : > { %v2270_v60 = vpop.xlane.xlu2 %955 }
 0x261   : > { %v2266_v56 = vpop.f32.mrf.mxu2  ;;  %v2268_v57 = vpop.f32.mrf.mxu3 }
 0x262   : > { %2652 = vst [vmem:[#allocation12_spill] sm:$0xff] %v2266_v56 }
 0x263   : > { %2653 = vst [vmem:[#allocation13_spill] sm:$0xff] %v2268_v57 }
 0x267   : > { %v2278_v4 = vpop.xlane.xlu2 %958 }
 0x269   : > { %v2272_v61 = vpop.f32.mrf.mxu2  ;;  %v2274_v0 = vpop.f32.mrf.mxu3 }
 0x26a   : > { %2654 = vst [vmem:[#allocation14_spill] sm:$0xff] %v2272_v61  ;;  %v1002_v1 = vmax.f32 %v2272_v61, %v2274_v0 }
 0x26b   : > { %2655 = vst [vmem:[#allocation15_spill] sm:$0xff] %v2274_v0 }
 0x26c   : > { %1003 = vmax.xlane.f32.xlu2 %v1002_v1 }
 0x26f   : > { %v2286_v12 = vpop.xlane.xlu2 %961 }
 0x271   : > { %v2280_v5 = vpop.f32.mrf.mxu2  ;;  %v2282_v8 = vpop.f32.mrf.mxu3 }
 0x272   : > { %2656 = vst [vmem:[#allocation16_spill] sm:$0xff] %v2280_v5  ;;  %v1005_v9 = vmax.f32 %v2280_v5, %v2282_v8 }
 0x273   : > { %2657 = vst [vmem:[#allocation17_spill] sm:$0xff] %v2282_v8  ;;  %v999_v8 = vmax.f32 %v2266_v56, %v2268_v57 }
 0x274   : > { %1006 = vmax.xlane.f32.xlu0 %v1005_v9  ;;  %v445_v9 = vld [vmem:[%s2620_s5 + $0x8] sm:$0xff] }
 0x275   : > { %1515 = vmatmul.msk.f32.gmra.mxu0 %vm350_vm0, %v445_v9  ;;  %1520 = vmatmul.msk.f32.gmra.mxu1 %vm350_vm0, %v445_v9 }
 0x279   : > { %v2288_v13 = vpop.f32.mrf.mxu2  ;;  %v2290_v16 = vpop.f32.mrf.mxu3 }
 0x27a   : > { %2658 = vst [vmem:[#allocation18_spill] sm:$0xff] %v2288_v13  ;;  %v1008_v17 = vmax.f32 %v2288_v13, %v2290_v16 }
 0x27b   : > { %2659 = vst [vmem:[#allocation19_spill] sm:$0xff] %v2290_v16  ;;  %v447_v16 = vld [vmem:[%s2620_s5 + $0x18] sm:$0xff] }
 0x27c   : > { %1009 = vmax.xlane.f32.xlu1 %v1008_v17 }
 0x27f   : > { %v2294_v20 = vpop.xlane.xlu2 %967 }
 0x281   : > { %v2296_v21 = vpop.f32.mrf.mxu2  ;;  %v2298_v24 = vpop.f32.mrf.mxu3 }
 0x282   : > { %2660 = vst [vmem:[#allocation20_spill] sm:$0xff] %v2296_v21  ;;  %v1011_v25 = vmax.f32 %v2296_v21, %v2298_v24 }
 0x283   : > { %2661 = vst [vmem:[#allocation21_spill] sm:$0xff] %v2298_v24 }
 0x284   : > { %1012 = vmax.xlane.f32.xlu2 %v1011_v25 }
 0x287   : > { %v2302_v28 = vpop.xlane.xlu2 %970 }
 0x289   : > { %v2304_v29 = vpop.f32.mrf.mxu2  ;;  %v2306_v32 = vpop.f32.mrf.mxu3 }
 0x28a   : > { %2662 = vst [vmem:[#allocation22_spill] sm:$0xff] %v2304_v29  ;;  %v1014_v33 = vmax.f32 %v2304_v29, %v2306_v32 }
 0x28b   : > { %2663 = vst [vmem:[#allocation23_spill] sm:$0xff] %v2306_v32 }
 0x28c   : > { %1015 = vmax.xlane.f32.xlu2 %v1014_v33 }
 0x28f   : > { %v2310_v36 = vpop.xlane.xlu2 %973 }
 0x291   : > { %v2312_v37 = vpop.f32.mrf.mxu2  ;;  %v2314_v41 = vpop.f32.mrf.mxu3 }
 0x292   : > { %2664 = vst [vmem:[#allocation24_spill] sm:$0xff] %v2312_v37  ;;  %v1017_v1 = vmax.f32 %v2312_v37, %v2314_v41 }
 0x293   : > { %2665 = vst [vmem:[#allocation25_spill] sm:$0xff] %v2314_v41 }
 0x294   : > { %1018 = vmax.xlane.f32.xlu0 %v1017_v1  ;;  %v446_v1 = vld [vmem:[%s2620_s5 + $0x10] sm:$0xff] }
 0x295   : > { %1516 = vmatmul.msk.f32.gmra.mxu0 %vm350_vm0, %v446_v1  ;;  %1521 = vmatmul.msk.f32.gmra.mxu1 %vm350_vm0, %v446_v1 }
 0x297   : > { %v2329_v0 = vpop.xlane.xlu2 %976 }
 0x299   : > { %v2323_v17 = vpop.f32.mrf.mxu2  ;;  %v2325_v25 = vpop.f32.mrf.mxu3 }
 0x29a   : > { %2666 = vst [vmem:[#allocation26_spill] sm:$0xff] %v2323_v17  ;;  %v1020_v33 = vmax.f32 %v2323_v17, %v2325_v25 }
 0x29b   : > { %2667 = vst [vmem:[#allocation27_spill] sm:$0xff] %v2325_v25 }
 0x29c   : > { %1021 = vmax.xlane.f32.xlu2 %v1020_v33 }
 0x29d   : > { %1517 = vmatmul.msk.f32.gmra.mxu0 %vm350_vm0, %v447_v16  ;;  %1522 = vmatmul.msk.f32.gmra.mxu1 %vm350_vm0, %v447_v16 }
 0x29f   : > { %v2344_v33 = vpop.xlane.xlu2 %979 }
 0x2a1   : > { %v2336_v61 = vpop.f32.mrf.mxu2  ;;  %v2338_v9 = vpop.f32.mrf.mxu3 }
 0x2a2   : > { %2668 = vst [vmem:[#allocation28_spill] sm:$0xff] %v2336_v61  ;;  %v1023_v5 = vmax.f32 %v2336_v61, %v2338_v9 }
 0x2a3   : > { %2669 = vst [vmem:[#allocation29_spill] sm:$0xff] %v2338_v9 }
 0x2a4   : > { %1000 = vmax.xlane.f32.xlu2 %v999_v8  ;;  %1024 = vmax.xlane.f32.xlu0 %v1023_v5  ;;  %v2357_v5 = vpop.permute.xlu0 %456 }
 0x2a7   : > { %v983_v8 = vpop.xlane.xlu2 %982 }
 0x2a9   : > { %v2351_v1 = vpop.f32.mrf.mxu2  ;;  %v2353_v13 = vpop.f32.mrf.mxu3 }
 0x2aa   : > { %2670 = vst [vmem:[#allocation30_spill] sm:$0xff] %v2351_v1  ;;  %v1026_v57 = vmax.f32 %v2351_v1, %v2353_v13 }
 0x2ab   : > { %2671 = vst [vmem:[#allocation31_spill] sm:$0xff] %v2353_v13 }
 0x2ac   : > { %1027 = vmax.xlane.f32.xlu0 %v1026_v57  ;;  %v2365_v32 = vpop.xlane.xlu0 %964  ;;  %v450_v57 = vld [vmem:[%s2621_s6 + $0x8] sm:$0xff] }
 0x2b1   : > { %v2359_v56 = vpop.f32.mrf.mxu2  ;;  %v2361_v24 = vpop.f32.mrf.mxu3 }
 0x2b2   : > { %2672 = vst [vmem:[#allocation32_spill] sm:$0xff] %v2359_v56  ;;  %v1029_v21 = vmax.f32 %v2359_v56, %v2361_v24  ;;  %v452_v56 = vld [vmem:[%s2621_s6 + $0x18] sm:$0xff] }
 0x2b3   : > { %2673 = vst [vmem:[#allocation33_spill] sm:$0xff] %v2361_v24 }
 0x2b4   : > { %1030 = vmax.xlane.f32.xlu0 %v1029_v21  ;;  %v986_v17 = vpop.xlane.xlu0 %985 }
 0x2b7   : > { %v989_v16 = vpop.xlane.xlu2 %988 }
 0x2b8   : > { %v1069_v21 = vsub.f32 %v2238_v34, %v989_v16  ;;  %v1070_v13 = vsub.f32 %v2240_v35, %v989_v16  ;;  %v1067_v34 = vsub.f32 %v2230_v30, %v986_v17  ;;  %v1068_v35 = vsub.f32 %v2232_v31, %v986_v17 }
 0x2b9   : > { %v2367_v29 = vpop.f32.mrf.mxu2  ;;  %v2369_v41 = vpop.f32.mrf.mxu3  ;;  %v1063_v31 = vsub.f32 %v2214_v22, %v2344_v33  ;;  %v1062_v22 = vsub.f32 %v2208_v19, %v2329_v0  ;;  %v1057_v19 = vsub.f32 %v2190_v10, %v2302_v28  ;;  %v1056_v10 = vsub.f32 %v2184_v7, %v2294_v20 }
 0x2ba   : > { %2674 = vst [vmem:[#allocation34_spill] sm:$0xff] %v2367_v29  ;;  %v1032_v37 = vmax.f32 %v2367_v29, %v2369_v41  ;;  %v1157_v16 = vmul.f32 1.442695, %v1067_v34 }
 0x2bb   : > { %2675 = vst [vmem:[#allocation35_spill] sm:$0xff] %v2369_v41  ;;  %v1135_v7 = vmul.f32 1.442695, %v1056_v10 }
 0x2bc   : > { %461 = vperm.xlu2 %1660, %v450_v57   ;;  %1033 = vmax.xlane.f32.xlu0 %v1032_v37 }
 0x2bf   : > { %v992_v25 = vpop.xlane.xlu2 %991 }
 0x2c0   : > { %v1071_v9 = vsub.f32 %v2248_v39, %v992_v25  ;;  %v1072_v61 = vsub.f32 %v2250_v40, %v992_v25  ;;  %v1161_v39 = vmul.f32 1.442695, %v1069_v21  ;;  %v1163_v40 = vmul.f32 1.442695, %v1070_v13 }
 0x2c1   : > { %v2380_v1 = vpop.f32.mrf.mxu2  ;;  %v2382_v24 = vpop.f32.mrf.mxu3  ;;  %v1065_v25 = vsub.f32 %v2222_v26, %v983_v8  ;;  %v1061_v21 = vsub.f32 %v2206_v18, %v2329_v0  ;;  %v1060_v18 = vsub.f32 %v2200_v15, %v2310_v36  ;;  %v1055_v15 = vsub.f32 %v2182_v6, %v2294_v20 }
 0x2c2   : > { %2676 = vst [vmem:[#allocation36_spill] sm:$0xff] %v2382_v24  ;;  %v1165_v57 = vmul.f32 1.442695, %v1071_v9  ;;  %v1167_v37 = vmul.f32 1.442695, %v1072_v61  ;;  %v1035_v41 = vmax.f32 %v2380_v1, %v2382_v24  ;;  %v1066_v9 = vsub.f32 %v2224_v27, %v983_v8 }
 0x2c3   : > { %v1159_v61 = vmul.f32 1.442695, %v1068_v35  ;;  %v1153_v26 = vmul.f32 1.442695, %v1065_v25  ;;  %v1064_v27 = vsub.f32 %v2216_v23, %v2344_v33  ;;  %v1059_v23 = vsub.f32 %v2198_v14, %v2310_v36 }
 0x2c4   : > { %1661 = vpow2.f32 %v1165_v57  ;;  %471 = vperm.xlu2 %1660, %v452_v56   ;;  %1036 = vmax.xlane.f32.xlu0 %v1035_v41  ;;  %v1155_v13 = vmul.f32 1.442695, %v1066_v9  ;;  %v1149_v57 = vmul.f32 1.442695, %v1063_v31  ;;  %v1145_v33 = vmul.f32 1.442695, %v1061_v21 }
 0x2c5   : > { %1663 = vpow2.f32 %v1167_v37  ;;  %v1151_v37 = vmul.f32 1.442695, %v1064_v27  ;;  %v1147_v35 = vmul.f32 1.442695, %v1062_v22  ;;  %v1141_v0 = vmul.f32 1.442695, %v1059_v23 }
 0x2c6   : > { %1665 = vpow2.f32 %v1161_v39  ;;  %v1058_v14 = vsub.f32 %v2192_v11, %v2302_v28  ;;  %v1137_v36 = vmul.f32 1.442695, %v1057_v19  ;;  %v451_v11 = vld [vmem:[%s2621_s6 + $0x10] sm:$0xff]  ;;  %v1133_v31 = vmul.f32 1.442695, %v1055_v15 }
 0x2c7   : > { %1667 = vpow2.f32 %v1163_v40  ;;  %v1054_v6 = vsub.f32 %v2176_v3, %v2365_v32  ;;  %v1052_v3 = vsub.f32 %v2168_v63, %v2286_v12  ;;  %v1049_v21 = vsub.f32 %v2158_v58, %v2278_v4 }
 0x2c8   : > { %1669 = vpow2.f32 %v1157_v16  ;;  %v1143_v16 = vmul.f32 1.442695, %v1060_v18  ;;  %v993_v63 = vmax.f32 %v2256_v45, %v2258_v48  ;;  %v1048_v58 = vsub.f32 %v2152_v55, %v2270_v60 }
 0x2c9   : > { %v2393_v29 = vpop.f32.mrf.mxu2  ;;  %v2395_v24 = vpop.f32.mrf.mxu3  ;;  %1671 = vpow2.f32 %v1159_v61  ;;  %v1127_v22 = vmul.f32 1.442695, %v1052_v3  ;;  %v1043_v55 = vsub.f32 %v2134_v46, %v2254_v44  ;;  %v1042_v46 = vsub.f32 %v2128_v43, %v2246_v38 }
 0x2ca   : > { %v1662_v30 = vpop.eup %1661  ;;  %v1038_v56 = vmax.f32 %v2393_v29, %v2395_v24  ;;  %1673 = vpow2.f32 %v1153_v26  ;;  %v448_v26 = vld [vmem:[%s2620_s5 + $0x20] sm:$0x1] }
 0x2cb   : > { %v1664_v41 = vpop.eup %1663  ;;  %1233 = vmatpush.xpose.msrb.mxu0 %v1662_v30  ;;  %1675 = vpow2.f32 %v1155_v13  ;;  %v1139_v30 = vmul.f32 1.442695, %v1058_v14  ;;  %1523 = vmatmul.msk.f32.gmra.mxu1 %vm350_vm0, %v448_v26  ;;  %v1107_v15 = vmul.f32 1.442695, %v1042_v46  ;;  %v2683_v46 = vld [vmem:[#allocation31_spill] sm:$0xff] }
 0x2cc   : > { %1265 = vmatpush.xpose.msrb.mxu1 %v1664_v41  ;;  %1039 = vmax.xlane.f32.xlu0 %v1038_v56  ;;  %v1666_v17 = vpop.eup %1665  ;;  %1677 = vpow2.f32 %v1149_v57  ;;  %v1053_v41 = vsub.f32 %v2174_v2, %v2365_v32  ;;  %v1051_v2 = vsub.f32 %v2166_v62, %v2286_v12  ;;  %v1131_v32 = vmul.f32 1.442695, %v1054_v6 }
 0x2cd   : > { %v1668_v8 = vpop.eup %1667  ;;  %1679 = vpow2.f32 %v1151_v37  ;;  %1518 = vmatmul.msk.f32.gmra.mxu0 %vm350_vm0, %v448_v26  ;;  %v1050_v62 = vsub.f32 %v2160_v59, %v2278_v4  ;;  %v1047_v12 = vsub.f32 %v2150_v54, %v2270_v60  ;;  %v1046_v54 = vsub.f32 %v2144_v51, %v2260_v49 }
 0x2ce   : > { %v1670_v34 = vpop.eup %1669  ;;  %1681 = vpow2.f32 %v1145_v33  ;;  %v1129_v13 = vmul.f32 1.442695, %v1053_v41  ;;  %v1125_v57 = vmul.f32 1.442695, %v1051_v2  ;;  %v1045_v33 = vsub.f32 %v2142_v50, %v2260_v49 }
 0x2cf   : > { %1234 = vmatpush.xpose.msrb.mxu0 %v1666_v17  ;;  %v1672_v39 = vpop.eup %1671  ;;  %1683 = vpow2.f32 %v1147_v35  ;;  %v1123_v23 = vmul.f32 1.442695, %v1050_v62  ;;  %v1117_v18 = vmul.f32 1.442695, %v1047_v12  ;;  %v1119_v35 = vmul.f32 1.442695, %v1048_v58 }
 0x2d0   : > { %1266 = vmatpush.xpose.msrb.mxu1 %v1668_v8  ;;  %v1674_v40 = vpop.eup %1673  ;;  %1685 = vpow2.f32 %v1141_v0  ;;  %v1113_v60 = vmul.f32 1.442695, %v1045_v33  ;;  %v1044_v50 = vsub.f32 %v2136_v47, %v2254_v44  ;;  %v1115_v19 = vmul.f32 1.442695, %v1046_v54  ;;  %v2677_v58 = vld [vmem:[#allocation36_spill] sm:$0xff]  ;;  %v2678_v33 = vld [vmem:[#allocation34_spill] sm:$0xff] }
 0x2d1   : > { %v1676_v25 = vpop.eup %1675  ;;  %1687 = vpow2.f32 %v1143_v16  ;;  %v1041_v51 = vsub.f32 %v2126_v42, %v2246_v38  ;;  %v1109_v49 = vmul.f32 1.442695, %v1043_v55  ;;  %v511_v38 = vpop.f32.mrf.mxu0  ;;  %v996_v6 = vmax.f32 %v2262_v52, %v2264_v53  ;;  %v2680_v55 = vld [vmem:[#allocation32_spill] sm:$0xff] }
 0x2d2   : > { %v1678_v9 = vpop.eup %1677  ;;  %1689 = vpow2.f32 %v1137_v36 }
 0x2d3   : > { %1235 = vmatpush.xpose.msrb.mxu0 %v1670_v34  ;;  %v1680_v61 = vpop.eup %1679  ;;  %1691 = vpow2.f32 %v1139_v30  ;;  %v1105_v44 = vmul.f32 1.442695, %v1041_v51 }
 0x2d4   : > { %1267 = vmatpush.xpose.msrb.mxu1 %v1672_v39  ;;  %v1682_v28 = vpop.eup %1681  ;;  %1693 = vpow2.f32 %v1133_v31  ;;  %v1121_v39 = vmul.f32 1.442695, %v1049_v21  ;;  %v2464_v31 = vadd.f32 %v511_v38, %v2357_v5  ;;  %v2685_v38 = vld [vmem:[#allocation29_spill] sm:$0xff] }
 0x2d5   : > { %v1684_v56 = vpop.eup %1683  ;;  %1695 = vpow2.f32 %v1135_v7 }
 0x2d6   : > { %v1686_v20 = vpop.eup %1685  ;;  %1697 = vpow2.f32 %v1129_v13  ;;  %v453_v13 = vld [vmem:[%s2621_s6 + $0x20] sm:$0x1] }
 0x2d7   : > { %1236 = vmatpush.xpose.msrb.mxu0 %v1674_v40  ;;  %v1688_v27 = vpop.eup %1687  ;;  %1699 = vpow2.f32 %v1131_v32 }
 0x2d8   : > { %1268 = vmatpush.xpose.msrb.mxu1 %v1676_v25  ;;  %v1690_v17 = vpop.eup %1689  ;;  %1701 = vpow2.f32 %v1125_v57 }
 0x2d9   : > { %v1692_v8 = vpop.eup %1691  ;;  %1703 = vpow2.f32 %v1127_v22 }
 0x2da   : > { %v1694_v37 = vpop.eup %1693  ;;  %1705 = vpow2.f32 %v1121_v39 }
 0x2db   : > { %1237 = vmatpush.xpose.msrb.mxu0 %v1678_v9  ;;  %v1696_v34 = vpop.eup %1695  ;;  %1707 = vpow2.f32 %v1123_v23  ;;  %v1111_v9 = vmul.f32 1.442695, %v1044_v50 }
 0x2dc   : > { %1269 = vmatpush.xpose.msrb.mxu1 %v1680_v61  ;;  %v1698_v59 = vpop.eup %1697  ;;  %1709 = vpow2.f32 %v1117_v18 }
 0x2dd   : > { %v1700_v4 = vpop.eup %1699  ;;  %1711 = vpow2.f32 %v1119_v35  ;;  %v2679_v35 = vld [vmem:[#allocation35_spill] sm:$0xff] }
 0x2de   : > { %v1702_v40 = vpop.eup %1701  ;;  %1713 = vpow2.f32 %v1113_v60 }
 0x2df   : > { %1238 = vmatpush.xpose.msrb.mxu0 %v1682_v28  ;;  %v1704_v25 = vpop.eup %1703  ;;  %v2455_v16 = vpop.xlane.xlu2 %1003  ;;  %1715 = vpow2.f32 %v1115_v19 }
 0x2e0   : > { %1270 = vmatpush.xpose.msrb.mxu1 %v1684_v56  ;;  %466 = vperm.xlu0 %1659, %v451_v11   ;;  %v1706_v0 = vpop.eup %1705  ;;  %1717 = vpow2.f32 %v1109_v49  ;;  %v543_v28 = vpop.f32.mrf.mxu1 }
 0x2e1   : > { %v1708_v14 = vpop.eup %1707  ;;  %1719 = vpow2.f32 %v1111_v9  ;;  %v2469_v7 = vadd.f32 %v543_v28, %v2357_v5 }
 0x2e2   : > { %v1710_v61 = vpop.eup %1709  ;;  %1721 = vpow2.f32 %v1105_v44 }
 0x2e3   : > { %1239 = vmatpush.xpose.msrb.mxu0 %v1686_v20  ;;  %v1712_v47 = vpop.eup %1711  ;;  %1723 = vpow2.f32 %v1107_v15 }
 0x2e4   : > { %1271 = vmatpush.xpose.msrb.mxu1 %v1688_v27  ;;  %v1714_v36 = vpop.eup %1713 }
 0x2e5   : > { %v1716_v42 = vpop.eup %1715 }
 0x2e6   : > { %v1718_v30 = vpop.eup %1717 }
 0x2e7   : > { %1240 = vmatpush.xpose.msrb.mxu0 %v1690_v17  ;;  %v1720_v43 = vpop.eup %1719  ;;  %v2461_v41 = vpop.xlane.xlu0 %1006 }
 0x2e8   : > { %1272 = vmatpush.xpose.msrb.mxu1 %v1692_v8  ;;  %v1722_v11 = vpop.eup %1721 }
 0x2e9   : > { %v1724_v56 = vpop.eup %1723 }
 0x2eb   : > { %1241 = vmatpush.xpose.msrb.mxu0 %v1694_v37 }
 0x2ec   : > { %1273 = vmatpush.xpose.msrb.mxu1 %v1696_v34 }
 0x2ed   : > { %994 = vmax.xlane.f32.xlu2 %v993_v63 }
 0x2ef   : > { %1242 = vmatpush.xpose.msrb.mxu0 %v1698_v59 }
 0x2f0   : > { %1274 = vmatpush.xpose.msrb.mxu1 %v1700_v4 }
 0x2f2   : > { %v514_v32 = vpop.f32.mrf.mxu0  ;;  %v546_v17 = vpop.f32.mrf.mxu1 }
 0x2f3   : > { %1243 = vmatpush.xpose.msrb.mxu0 %v1702_v40 }
 0x2f4   : > { %1275 = vmatpush.xpose.msrb.mxu1 %v1704_v25 }
 0x2f7   : > { %1244 = vmatpush.xpose.msrb.mxu0 %v1706_v0  ;;  %v2459_v10 = vpop.xlane.xlu2 %1012 }
 0x2f8   : > { %1276 = vmatpush.xpose.msrb.mxu1 %v1708_v14  ;;  %v2682_v14 = vld [vmem:[#allocation30_spill] sm:$0xff] }
 0x2fb   : > { %1245 = vmatpush.xpose.msrb.mxu0 %v1710_v61 }
 0x2fc   : > { %1277 = vmatpush.xpose.msrb.mxu1 %v1712_v47 }
 0x2ff   : > { %1246 = vmatpush.xpose.msrb.mxu0 %v1714_v36  ;;  %v2471_v20 = vpop.xlane.xlu2 %1015 }
 0x300   : > { %1278 = vmatpush.xpose.msrb.mxu1 %v1716_v42  ;;  %v2684_v42 = vld [vmem:[#allocation28_spill] sm:$0xff] }
 0x303   : > { %1247 = vmatpush.xpose.msrb.mxu0 %v1718_v30 }
 0x304   : > { %1279 = vmatpush.xpose.msrb.mxu1 %v1720_v43 }
 0x307   : > { %1248 = vmatpush.xpose.msrb.mxu0 %v1722_v11  ;;  %v2475_v26 = vpop.xlane.xlu0 %1018 }
 0x308   : > { %1280 = vmatpush.xpose.msrb.mxu1 %v1724_v56 }
 0x30a   : > { %1249 = vmatmul.f32.vlgmr.msrb.gmra.mxu0 %v2464_v31  ;;  %997 = vmax.xlane.f32.xlu0 %v996_v6 }
 0x30b   : > { %1281 = vmatmul.f32.vlgmr.msrb.gmra.mxu1 %v2469_v7 }
 0x30f   : > { %v2477_v27 = vpop.xlane.xlu2 %1021 }
 0x312   : > { %v517_v47 = vpop.f32.mrf.mxu0  ;;  %v549_v15 = vpop.f32.mrf.mxu1 }
 0x317   : > { %v2479_v2 = vpop.xlane.xlu0 %1024  ;;  %v2484_v3 = vpop.xlane.xlu2 %1000 }
 0x318   : > { %v1093_v30 = vsub.f32 %v2684_v42, %v2479_v2  ;;  %v1094_v11 = vsub.f32 %v2685_v38, %v2479_v2  ;;  %v2695_v42 = vld [vmem:[#allocation19_spill] sm:$0xff] }
 0x31a   : > { %v1211_v2 = vmul.f32 1.442695, %v1094_v11 }
 0x31e   : > { %476 = vperm.xlu0 %1659, %v453_v13  }
 0x31f   : > { %v1028_v5 = vpop.xlane.xlu0 %1027  ;;  %v462_v8 = vpop.permute.xlu2 %461 }
 0x320   : > { %v2486_v21 = vadd.f32 %v514_v32, %v462_v8  ;;  %v2488_v57 = vadd.f32 %v546_v17, %v462_v8  ;;  %v1095_v51 = vsub.f32 %v2682_v14, %v1028_v5  ;;  %v1096_v9 = vsub.f32 %v2683_v46, %v1028_v5  ;;  %v2686_v17 = vld [vmem:[#allocation26_spill] sm:$0xff]  ;;  %v2693_v46 = vld [vmem:[#allocation21_spill] sm:$0xff] }
 0x321   : > { %v1091_v8 = vsub.f32 %v2686_v17, %v2477_v27 }
 0x322   : > { %1252 = vmatmul.f32.gmra.mxu0 %v2486_v21  ;;  %1284 = vmatmul.f32.gmra.mxu1 %v2488_v57  ;;  %v1213_v43 = vmul.f32 1.442695, %v1095_v51  ;;  %v1215_v28 = vmul.f32 1.442695, %v1096_v9  ;;  %v1086_v9 = vsub.f32 %v2693_v46, %v2459_v10 }
 0x327   : > { %v1031_v62 = vpop.xlane.xlu0 %1030 }
 0x328   : > { %v1097_v60 = vsub.f32 %v2680_v55, %v1031_v62  ;;  %v2690_v55 = vld [vmem:[#allocation22_spill] sm:$0xff] }
 0x32a   : > { %v1217_v49 = vmul.f32 1.442695, %v1097_v60  ;;  %v1087_v60 = vsub.f32 %v2690_v55, %v2471_v20 }
 0x32c   : > { %v1197_v51 = vmul.f32 1.442695, %v1087_v60 }
 0x32f   : > { %v1034_v22 = vpop.xlane.xlu0 %1033 }
 0x330   : > { %v1099_v18 = vsub.f32 %v2678_v33, %v1034_v22  ;;  %v1100_v40 = vsub.f32 %v2679_v35, %v1034_v22  ;;  %v2687_v22 = vld [vmem:[#allocation27_spill] sm:$0xff] }
 0x332   : > { %v1221_v50 = vmul.f32 1.442695, %v1099_v18  ;;  %v1223_v19 = vmul.f32 1.442695, %v1100_v40 }
 0x337   : > { %v1037_v37 = vpop.xlane.xlu0 %1036 }
 0x338   : > { %v1101_v63 = vsub.f32 %v2380_v1, %v1037_v37  ;;  %v1102_v23 = vsub.f32 %v2677_v58, %v1037_v37  ;;  %v2681_v1 = vld [vmem:[#allocation33_spill] sm:$0xff]  ;;  %v1092_v37 = vsub.f32 %v2687_v22, %v2477_v27  ;;  %v2698_v22 = vld [vmem:[#allocation14_spill] sm:$0xff] }
 0x339   : > { %v2689_v27 = vld [vmem:[#allocation25_spill] sm:$0xff] }
 0x33a   : > { %v1225_v54 = vmul.f32 1.442695, %v1101_v63  ;;  %v1227_v25 = vmul.f32 1.442695, %v1102_v23  ;;  %v1205_v23 = vmul.f32 1.442695, %v1091_v8  ;;  %v1090_v33 = vsub.f32 %v2689_v27, %v2475_v26 }
 0x33b   : > { %v1207_v18 = vmul.f32 1.442695, %v1092_v37  ;;  %v1079_v37 = vsub.f32 %v2698_v22, %v2455_v16  ;;  %v2701_v27 = vld [vmem:[#allocation13_spill] sm:$0xff] }
 0x33f   : > { %v1040_v34 = vpop.xlane.xlu0 %1039 }
 0x340   : > { %v1103_v12 = vsub.f32 %v2393_v29, %v1040_v34  ;;  %v1104_v39 = vsub.f32 %v2395_v24, %v1040_v34  ;;  %v1098_v29 = vsub.f32 %v2681_v1, %v1031_v62  ;;  %v1209_v62 = vmul.f32 1.442695, %v1093_v30  ;;  %v2691_v1 = vld [vmem:[#allocation23_spill] sm:$0xff] }
 0x342   : > { %v1229_v59 = vmul.f32 1.442695, %v1103_v12  ;;  %v1231_v4 = vmul.f32 1.442695, %v1104_v39  ;;  %v1219_v61 = vmul.f32 1.442695, %v1098_v29  ;;  %v520_v12 = vpop.f32.mrf.mxu0  ;;  %v1088_v29 = vsub.f32 %v2691_v1, %v2471_v20 }
 0x343   : > { %v2688_v39 = vld [vmem:[#allocation24_spill] sm:$0xff] }
 0x344   : > { %1725 = vpow2.f32 %v1229_v59  ;;  %v1089_v58 = vsub.f32 %v2688_v39, %v2475_v26  ;;  %v552_v59 = vpop.f32.mrf.mxu1  ;;  %v1199_v20 = vmul.f32 1.442695, %v1088_v29 }
 0x345   : > { %1727 = vpow2.f32 %v1231_v4  ;;  %v472_v4 = vpop.permute.xlu2 %471 }
 0x346   : > { %1729 = vpow2.f32 %v1225_v54  ;;  %v2520_v40 = vadd.f32 %v520_v12, %v472_v4 }
 0x347   : > { %1731 = vpow2.f32 %v1227_v25  ;;  %v2522_v25 = vadd.f32 %v552_v59, %v472_v4 }
 0x348   : > { %1733 = vpow2.f32 %v1221_v50  ;;  %v1201_v50 = vmul.f32 1.442695, %v1089_v58 }
 0x349   : > { %1735 = vpow2.f32 %v1223_v19  ;;  %v1203_v19 = vmul.f32 1.442695, %v1090_v33  ;;  %v1078_v33 = vsub.f32 %v2701_v27, %v2484_v3 }
 0x34a   : > { %v1726_v24 = vpop.eup %1725  ;;  %1737 = vpow2.f32 %v1217_v49  ;;  %v1010_v49 = vpop.xlane.xlu1 %1009 }
 0x34b   : > { %v1728_v0 = vpop.eup %1727  ;;  %1297 = vmatpush.xpose.msra.mxu0 %v1726_v24  ;;  %1739 = vpow2.f32 %v1219_v61  ;;  %v1084_v30 = vsub.f32 %v2695_v42, %v1010_v49 }
 0x34c   : > { %1329 = vmatpush.xpose.msra.mxu1 %v1728_v0  ;;  %v1730_v44 = vpop.eup %1729  ;;  %1741 = vpow2.f32 %v1213_v43  ;;  %v2692_v0 = vld [vmem:[#allocation20_spill] sm:$0xff]  ;;  %v1195_v43 = vmul.f32 1.442695, %v1086_v9 }
 0x34d   : > { %v1732_v36 = vpop.eup %1731  ;;  %1743 = vpow2.f32 %v1215_v28  ;;  %v1085_v14 = vsub.f32 %v2692_v0, %v2459_v10  ;;  %v2696_v28 = vld [vmem:[#allocation16_spill] sm:$0xff]  ;;  %v1191_v17 = vmul.f32 1.442695, %v1084_v30 }
 0x34e   : > { %v1734_v56 = vpop.eup %1733  ;;  %1745 = vpow2.f32 %v1209_v62  ;;  %v1081_v10 = vsub.f32 %v2696_v28, %v2461_v41 }
 0x34f   : > { %1298 = vmatpush.xpose.msra.mxu0 %v1730_v44  ;;  %v1736_v13 = vpop.eup %1735  ;;  %1747 = vpow2.f32 %v1211_v2  ;;  %v2694_v44 = vld [vmem:[#allocation18_spill] sm:$0xff] }
 0x350   : > { %1330 = vmatpush.xpose.msra.mxu1 %v1732_v36  ;;  %v1738_v34 = vpop.eup %1737  ;;  %1749 = vpow2.f32 %v1205_v23  ;;  %v1193_v36 = vmul.f32 1.442695, %v1085_v14  ;;  %v1185_v2 = vmul.f32 1.442695, %v1081_v10  ;;  %v2700_v23 = vld [vmem:[#allocation12_spill] sm:$0xff] }
 0x351   : > { %v1740_v63 = vpop.eup %1739  ;;  %1751 = vpow2.f32 %v1207_v18  ;;  %v1077_v59 = vsub.f32 %v2700_v23, %v2484_v3  ;;  %v1794_v23 = vld [vmem:[%s2064_s19 + $0x10] sm:$0xff] }
 0x352   : > { %v467_v6 = vpop.permute.xlu0 %466  ;;  %v1742_v54 = vpop.eup %1741  ;;  %1753 = vpow2.f32 %v1201_v50 }
 0x353   : > { %1299 = vmatpush.xpose.msra.mxu0 %v1734_v56  ;;  %v2506_v5 = vadd.f32 %v517_v47, %v467_v6  ;;  %v2508_v32 = vadd.f32 %v549_v15, %v467_v6  ;;  %v1744_v35 = vpop.eup %1743  ;;  %1755 = vpow2.f32 %v1203_v19  ;;  %v1083_v15 = vsub.f32 %v2694_v44, %v1010_v49  ;;  %v2697_v6 = vld [vmem:[#allocation17_spill] sm:$0xff] }
 0x354   : > { %1331 = vmatpush.xpose.msra.mxu1 %v1736_v13  ;;  %v1746_v26 = vpop.eup %1745  ;;  %1757 = vpow2.f32 %v1197_v51  ;;  %v1082_v13 = vsub.f32 %v2697_v6, %v2461_v41  ;;  %v1181_v41 = vmul.f32 1.442695, %v1079_v37 }
 0x355   : > { %1255 = vmatmul.f32.gmra.mxu0 %v2506_v5  ;;  %1287 = vmatmul.f32.gmra.mxu1 %v2508_v32  ;;  %v1748_v24 = vpop.eup %1747  ;;  %1759 = vpow2.f32 %v1199_v20  ;;  %v1189_v56 = vmul.f32 1.442695, %v1083_v15 }
 0x356   : > { %v1750_v61 = vpop.eup %1749  ;;  %1761 = vpow2.f32 %v1193_v36  ;;  %v1187_v12 = vmul.f32 1.442695, %v1082_v13 }
 0x357   : > { %1300 = vmatpush.xpose.msra.mxu0 %v1738_v34  ;;  %v1752_v47 = vpop.eup %1751  ;;  %1763 = vpow2.f32 %v1195_v43  ;;  %v2699_v34 = vld [vmem:[#allocation15_spill] sm:$0xff] }
 0x358   : > { %1332 = vmatpush.xpose.msra.mxu1 %v1740_v63  ;;  %v1754_v38 = vpop.eup %1753  ;;  %1765 = vpow2.f32 %v1189_v56  ;;  %v1080_v63 = vsub.f32 %v2699_v34, %v2455_v16  ;;  %v1177_v16 = vmul.f32 1.442695, %v1077_v59 }
 0x359   : > { %v1756_v11 = vpop.eup %1755  ;;  %1767 = vpow2.f32 %v1191_v17 }
 0x35a   : > { %v1758_v8 = vpop.eup %1757  ;;  %1769 = vpow2.f32 %v1185_v2  ;;  %v1183_v4 = vmul.f32 1.442695, %v1080_v63 }
 0x35b   : > { %1301 = vmatpush.xpose.msra.mxu0 %v1742_v54  ;;  %v1760_v62 = vpop.eup %1759  ;;  %1771 = vpow2.f32 %v1187_v12 }
 0x35c   : > { %1333 = vmatpush.xpose.msra.mxu1 %v1744_v35  ;;  %v1762_v39 = vpop.eup %1761  ;;  %1773 = vpow2.f32 %v1181_v41  ;;  %v1179_v35 = vmul.f32 1.442695, %v1078_v33 }
 0x35d   : > { %1258 = vmatmul.f32.gmra.mxu0 %v2520_v40  ;;  %1290 = vmatmul.f32.gmra.mxu1 %v2522_v25  ;;  %v1764_v58 = vpop.eup %1763  ;;  %1775 = vpow2.f32 %v1183_v4  ;;  %v1795_v4 = vld [vmem:[%s2064_s19 + $0x20] sm:$0xff] }
 0x35e   : > { %v1766_v18 = vpop.eup %1765  ;;  %1777 = vpow2.f32 %v1177_v16 }
 0x35f   : > { %1302 = vmatpush.xpose.msra.mxu0 %v1746_v26  ;;  %v1768_v54 = vpop.eup %1767  ;;  %1779 = vpow2.f32 %v1179_v35 }
 0x360   : > { %1334 = vmatpush.xpose.msra.mxu1 %v1748_v24  ;;  %v1770_v55 = vpop.eup %1769  ;;  %v995_v29 = vpop.xlane.xlu2 %994 }
 0x361   : > { %v1772_v60 = vpop.eup %1771  ;;  %v1073_v26 = vsub.f32 %v2256_v45, %v995_v29  ;;  %v1074_v51 = vsub.f32 %v2258_v48, %v995_v29  ;;  %v555_v48 = vpop.f32.mrf.mxu1 }
 0x362   : > { %v1774_v50 = vpop.eup %1773 }
 0x363   : > { %1303 = vmatpush.xpose.msra.mxu0 %v1750_v61  ;;  %v1776_v1 = vpop.eup %1775  ;;  %v1169_v9 = vmul.f32 1.442695, %v1073_v26  ;;  %v1171_v20 = vmul.f32 1.442695, %v1074_v51 }
 0x364   : > { %1335 = vmatpush.xpose.msra.mxu1 %v1752_v47  ;;  %v1778_v19 = vpop.eup %1777 }
 0x365   : > { %v1780_v14 = vpop.eup %1779 }
 0x367   : > { %1304 = vmatpush.xpose.msra.mxu0 %v1754_v38 }
 0x368   : > { %1336 = vmatpush.xpose.msra.mxu1 %v1756_v11 }
 0x36b   : > { %1305 = vmatpush.xpose.msra.mxu0 %v1758_v8  ;;  %v1374_v8 = vstv %s1363_s14 }
 0x36c   : > { %1337 = vmatpush.xpose.msra.mxu1 %v1760_v62 }
 0x36f   : > { %1306 = vmatpush.xpose.msra.mxu0 %v1762_v39 }
 0x370   : > { %1338 = vmatpush.xpose.msra.mxu1 %v1764_v58  ;;  %v1793_v58 = vld [vmem:[%s2064_s19] sm:$0xff] }
 0x373   : > { %1307 = vmatpush.xpose.msra.mxu0 %v1766_v18 }
 0x374   : > { %1339 = vmatpush.xpose.msra.mxu1 %v1768_v54  ;;  %v1796_v54 = vld [vmem:[%s2064_s19 + $0x30] sm:$0xff] }
 0x377   : > { %1308 = vmatpush.xpose.msra.mxu0 %v1770_v55 }
 0x378   : > { %1340 = vmatpush.xpose.msra.mxu1 %v1772_v60 }
 0x37b   : > { %1309 = vmatpush.xpose.msra.mxu0 %v1774_v50 }
 0x37c   : > { %1341 = vmatpush.xpose.msra.mxu1 %v1776_v1 }
 0x37d   : > { %v998_v3 = vpop.xlane.xlu0 %997 }
 0x37e   : > { %v1075_v24 = vsub.f32 %v2262_v52, %v998_v3  ;;  %v1076_v0 = vsub.f32 %v2264_v53, %v998_v3  ;;  %v523_v53 = vpop.f32.mrf.mxu0 }
 0x37f   : > { %1310 = vmatpush.xpose.msra.mxu0 %v1778_v19 }
 0x380   : > { %v1173_v49 = vmul.f32 1.442695, %v1075_v24  ;;  %v1175_v46 = vmul.f32 1.442695, %v1076_v0  ;;  %1342 = vmatpush.xpose.msra.mxu1 %v1780_v14 }
 0x382   : > { %1781 = vpow2.f32 %v1173_v49 }
 0x383   : > { %1783 = vpow2.f32 %v1175_v46 }
 0x384   : > { %1785 = vpow2.f32 %v1169_v9 }
 0x385   : > { %1787 = vpow2.f32 %v1171_v20 }
 0x387   : > { %v1250_v42 = vpop.f32.mrf.mxu0 }
 0x388   : > { %v1782_v61 = vpop.eup %1781  ;;  %v1282_v30 = vpop.f32.mrf.mxu1 }
 0x389   : > { %v1784_v47 = vpop.eup %1783  ;;  %1311 = vmatpush.xpose.msra.mxu0 %v1782_v61  ;;  %v1283_v10 = vadd.f32 %v1282_v30, %v1250_v42  ;;  %v1800_v30 = vld [vmem:[%s2064_s19 + $0x38] sm:$0xff] }
 0x38a   : > { %1343 = vmatpush.xpose.msra.mxu1 %v1784_v47  ;;  %v1786_v45 = vpop.eup %1785 }
 0x38b   : > { %v1788_v52 = vpop.eup %1787 }
 0x38d   : > { %1312 = vmatpush.xpose.msra.mxu0 %v1786_v45 }
 0x38e   : > { %1344 = vmatpush.xpose.msra.mxu1 %v1788_v52 }
 0x390   : > { %v477_v44 = vpop.permute.xlu0 %476 }
 0x391   : > { %v524_v15 = vadd.f32 %v523_v53, %v477_v44  ;;  %v556_v36 = vadd.f32 %v555_v48, %v477_v44  ;;  %v1797_v53 = vld [vmem:[%s2064_s19 + $0x8] sm:$0xff]  ;;  %v1798_v44 = vld [vmem:[%s2064_s19 + $0x18] sm:$0xff] }
 0x393   : > { %1261 = vmatmul.f32.gmra.mxu0 %v524_v15  ;;  %1293 = vmatmul.f32.gmra.mxu1 %v556_v36 }
 0x39b   : > { %1313 = vmatmul.f32.vlgmr.msra.gmra.mxu0 %v2464_v31  ;;  %1345 = vmatmul.f32.vlgmr.msra.gmra.mxu1 %v2469_v7 }
 0x39f   : > { %v1253_v31 = vpop.f32.mrf.mxu0  ;;  %v1285_v43 = vpop.f32.mrf.mxu1 }
 0x3a0   : > { %v1286_v56 = vadd.f32 %v1285_v43, %v1253_v31 }
 0x3a3   : > { %1316 = vmatmul.f32.gmra.mxu0 %v2486_v21  ;;  %1348 = vmatmul.f32.gmra.mxu1 %v2488_v57 }
 0x3ab   : > { %1319 = vmatmul.f32.gmra.mxu0 %v2506_v5  ;;  %1351 = vmatmul.f32.gmra.mxu1 %v2508_v32 }
 0x3b3   : > { %1322 = vmatmul.f32.gmra.mxu0 %v2520_v40  ;;  %1354 = vmatmul.f32.gmra.mxu1 %v2522_v25 }
 0x3bb   : > { %1325 = vmatmul.f32.gmra.mxu0 %v524_v15  ;;  %1357 = vmatmul.f32.gmra.mxu1 %v556_v36  ;;  %v1799_v36 = vld [vmem:[%s2064_s19 + $0x28] sm:$0xff]  ;;  %s1881_s19 = scalar_lea.hbm %s2623_s8, 128 }
 0x3bc   : > { %p1883_p4 = scmp.lt.s32.totalorder %s1881_s19, %s1877_s11 }
 0x3be   : > { %p1884_p7 = por %p1883_p4, %p1882_p3 }
 0x3c0   : > { %p1885_p8 = pnand %p1884_p7, %p1880_p2 }
 0x3d2   : > { %v1256_v7 = vpop.f32.mrf.mxu0  ;;  %v1288_v38 = vpop.f32.mrf.mxu1 }
 0x3d3   : > { %v1289_v6 = vadd.f32 %v1288_v38, %v1256_v7 }
 0x3da   : > { %v1259_v21 = vpop.f32.mrf.mxu0  ;;  %v1291_v11 = vpop.f32.mrf.mxu1 }
 0x3db   : > { %v1292_v13 = vadd.f32 %v1291_v11, %v1259_v21 }
 0x410   : > { %v1262_v57 = vpop.f32.mrf.mxu0  ;;  %v1294_v5 = vpop.f32.mrf.mxu1 }
 0x411   : > { %v1295_v28 = vadd.f32 %v1294_v5, %v1262_v57 }
 0x413   : > { %1789 = vrcp.f32 %v1295_v28 }
 0x418   : > { %v1314_v32 = vpop.f32.mrf.mxu0  ;;  %v1346_v40 = vpop.f32.mrf.mxu1 }
 0x419   : > { %v1790_v25 = vpop.eup %1789  ;;  %v1347_v26 = vadd.f32 %v1346_v40, %v1314_v32 }
 0x41a   : > { %v1364_v17 = vperm.slane %v1790_v25, 0 }
 0x41c   : > { %v1366_v62 = vmul.f32 %v1364_v17, %v1283_v10  ;;  %v1368_v22 = vmul.f32 %v1364_v17, %v1286_v56  ;;  %v1370_v37 = vmul.f32 %v1364_v17, %v1289_v6  ;;  %v1372_v2 = vmul.f32 %v1364_v17, %v1292_v13 }
 0x41e   : > { %v1375_v34 = vmul.f32 %v1374_v8, %v1366_v62  ;;  %v1377_v63 = vmul.f32 %v1374_v8, %v1368_v22  ;;  %v1379_v12 = vmul.f32 %v1374_v8, %v1370_v37  ;;  %v1381_v39 = vmul.f32 %v1374_v8, %v1372_v2 }
 0x420   : > { %v1383_v41 = vadd.f32 %v1793_v58, %v1375_v34  ;;  %v1385_v59 = vadd.f32 %v1794_v23, %v1377_v63  ;;  %v1387_v27 = vadd.f32 %v1795_v4, %v1379_v12  ;;  %v1317_v33 = vpop.f32.mrf.mxu0  ;;  %v1349_v18 = vpop.f32.mrf.mxu1  ;;  %v1389_v16 = vadd.f32 %v1796_v54, %v1381_v39 }
 0x421   : > { %v1350_v24 = vadd.f32 %v1349_v18, %v1317_v33 }
 0x422   : > { %1391 = vst [vmem:[%s2567_s21] sm:$0xff] %v1383_v41 }
 0x423   : > { %1393 = vst [vmem:[%s2567_s21 + $0x10] sm:$0xff] %v1385_v59 }
 0x424   : > { %1395 = vst [vmem:[%s2567_s21 + $0x20] sm:$0xff] %v1387_v27 }
 0x425   : > { %1397 = vst [vmem:[%s2567_s21 + $0x30] sm:$0xff] %v1389_v16 }
 0x428   : > { %v1320_v35 = vpop.f32.mrf.mxu0  ;;  %v1352_v55 = vpop.f32.mrf.mxu1 }
 0x429   : > { %v1353_v0 = vadd.f32 %v1352_v55, %v1320_v35 }
 0x430   : > { %v1323_v60 = vpop.f32.mrf.mxu0  ;;  %v1355_v50 = vpop.f32.mrf.mxu1 }
 0x431   : > { %v1356_v14 = vadd.f32 %v1355_v50, %v1323_v60 }
 0x438   : > { %v1326_v1 = vpop.f32.mrf.mxu0  ;;  %v1358_v29 = vpop.f32.mrf.mxu1 }
 0x439   : > { %v1359_v3 = vadd.f32 %v1358_v29, %v1326_v1 }
 0x43b   : > { %1791 = vrcp.f32 %v1359_v3 }
 0x441   : > { %v1792_v19 = vpop.eup %1791 }
 0x442   : > { %v1365_v51 = vperm.slane %v1792_v19, 0 }
 0x444   : > { %v1367_v49 = vmul.f32 %v1365_v51, %v1347_v26  ;;  %v1369_v46 = vmul.f32 %v1365_v51, %v1350_v24  ;;  %v1371_v9 = vmul.f32 %v1365_v51, %v1353_v0  ;;  %v1373_v20 = vmul.f32 %v1365_v51, %v1356_v14 }
 0x446   : > { %v1376_v61 = vmul.f32 %v1374_v8, %v1367_v49  ;;  %v1378_v47 = vmul.f32 %v1374_v8, %v1369_v46  ;;  %v1380_v45 = vmul.f32 %v1374_v8, %v1371_v9  ;;  %v1382_v52 = vmul.f32 %v1374_v8, %v1373_v20 }
 0x448   : > { %v1384_v48 = vadd.f32 %v1797_v53, %v1376_v61  ;;  %v1386_v15 = vadd.f32 %v1798_v44, %v1378_v47  ;;  %v1388_v42 = vadd.f32 %v1799_v36, %v1380_v45  ;;  %v1390_v31 = vadd.f32 %v1800_v30, %v1382_v52 }
 0x44a   : > { %1392 = vst [vmem:[%s2567_s21 + $0x8] sm:$0xff] %v1384_v48 }
 0x44b   : > { %1394 = vst [vmem:[%s2567_s21 + $0x18] sm:$0xff] %v1386_v15 }
 0x44c   : > { %1396 = vst [vmem:[%s2567_s21 + $0x28] sm:$0xff] %v1388_v42 }
 0x44d   : > { %1398 = vst [vmem:[%s2567_s21 + $0x38] sm:$0xff] %v1390_v31 }
 0x44e   : > { %1888 = shalt.err (!%p1885_p8)
}
 0x44f   : > { %s1936_s18 = smov 256   ;;  %s1937_s21 = smov 16  }
 0x450   : > { %1603 = dma.vmem_to_hbm [thread:$0]  (%p2024_p5), %s1413_s7, 1024, %s1415_s26, %s1400_s27, %s1936_s18, %s1936_s18, %s1937_s21  }
 0x451 PF: > { %p1620_p9 = scmp.ge.s32.totalorder %s1931_s10, 2  ;;  %s1429_s23 = sand.u32 1, %s1919_s29  }
 0x452   : > { %s1430_s24 = scalar_lea.sflag [#allocation5], %s1429_s23 }
 0x453   : > { %p1613_p10 = pnand %p1620_p9, %p2028_p6 }
 0x455   : > { %p1614_p11 = pneg %p1613_p10 }
 0x457   : > { %1914 = dma.done.wait (%p1614_p11), %s1430_s24, 1024  }
 0x458   : > { %1916 = vsyncadd (%p1614_p11), %s1430_s24, 4294966272  ;;  %p21_p12 = scmp.ge.s32.totalorder %s2011_s12, 4   ;;  %s2702_s29 = smov %s1923_s30 }
 0x459   : > { %s2703_s30 = smov %s1927_s9  ;;  %s2704_s9 = smov %s2022_s15 }
 0x45a   : > { %s2705_s10 = smov %s2011_s12  ;;  %23 = sbr.rel (!%p21_p12) target bundleno = 7 (0x7), region = 96 }
 0x45f   :  { %1436 = vsyncpa [#allocation4], 1 }
 0x460   :  { %1438 = vsyncpa [#allocation4 + $0x1], 1 }
 0x461   :  { %1439 = vsyncpa [#allocation7], 1 }
 0x462   :  { %1440 = vsyncpa [#allocation5], 1 }
 0x463   :  { %1442 = vsyncpa [#allocation5 + $0x1], 1 }

</bundles_post_ra>
